<compile_context>
chip_gen: v5e
topology: v5e:2x2
jax: 0.10.0
libtpu: 0.0.40
codegen_flags: <defaults>
</compile_context>

<pallas_src>
import math

import jax
import jax.numpy as jnp
from jax.experimental import pallas as pl
from jax.experimental.pallas import tpu as pltpu  # noqa: F401  (TPU backend assumed)

# ---- configuration (small, consistent with the module) --------------------
DIM = 32                  # dim
SEQ = 16                  # L (input_resolution)
NUM_HEADS = 4
WINDOW = 8                # window_size  (shift_size = 0)
MLP_RATIO = 4.0
MLP_HIDDEN = int(DIM * MLP_RATIO)   # 128
HEAD_DIM = DIM // NUM_HEADS         # 8
BATCH = 2
NTOK = BATCH * SEQ                  # 32 tokens, all handled in one kernel call
HTOK = NUM_HEADS * NTOK             # 128 = lane-packed (head, token) axis
NEG_INF = -1e30                     # cross-window mask value (exp underflows to 0)

# row offsets inside the packed (128, 128) constant slab
O_KMASK = 0                         # (DIM,  HTOK) block-diag head mask for K packing
O_RPBM = DIM                        # (NTOK, HTOK) rel-pos bias + cross-window -1e30
O_GRP = DIM + NTOK                  # (DIM,  DIM)  same-head lane-group mask
O_VEC = DIM + NTOK + DIM            # 1-D parameter rows (bias / scale / LN) start here

assert 3 * DIM <= 128 and MLP_HIDDEN <= 128 and HTOK == 128 and O_VEC + 9 <= 128


# ---- in-kernel helpers -----------------------------------------------------
def _erf(x):
    # Numerical Recipes erfc approximation (abs err < 1.2e-7) using only exp/abs/where.
    a = jnp.abs(x)
    t = 1.0 / (1.0 + 0.5 * a)
    poly = -1.26551223 + t * (1.00002368 + t * (0.37409196 + t * (0.09678418 +
           t * (-0.18628806 + t * (0.27886807 + t * (-1.13520398 + t * (1.48851587 +
           t * (-0.82215223 + t * 0.17087277))))))))
    tau = t * jnp.exp(-a * a + poly)
    erf_abs = 1.0 - tau
    return jnp.where(x >= 0.0, erf_abs, -erf_abs)


def _layernorm(x, w, b, eps=1e-5):
    mu = jnp.mean(x, axis=-1, keepdims=True)
    xc = x - mu
    var = jnp.mean(xc * xc, axis=-1, keepdims=True)
    return xc * jax.lax.rsqrt(var + eps) * w + b


# ---- Pallas kernel: the full (B*L, C) token slab in one invocation ---------
def swin_block_kernel(x_ref, wqkv_ref, wproj_ref, wfc1_ref, wfc2_ref,
                      consts_ref, vmask_ref, o_ref):
    x = x_ref[...]                                                  # (NTOK, C) f32

    kmask = consts_ref[O_KMASK:O_KMASK + DIM, :]                    # (C, HTOK)
    rpbm = consts_ref[O_RPBM:O_RPBM + NTOK, :]                      # (NTOK, HTOK)
    grp = consts_ref[O_GRP:O_GRP + DIM, 0:DIM]                      # (C, C)
    vmask = vmask_ref[...]                                          # (HTOK, C)

    # --- fused QKV projection (single wide matmul) ---
    qkv = jnp.dot(x, wqkv_ref[...], preferred_element_type=jnp.float32)
    qkv = qkv + consts_ref[O_VEC + 0:O_VEC + 1, 0:3 * DIM]          # (NTOK, 3C)
    q = qkv[:, 0:DIM]
    k = qkv[:, DIM:2 * DIM]
    v = qkv[:, 2 * DIM:3 * DIM]

    # --- cosine normalisation, all heads at once ---
    # (q*q) @ grp gives each head's sum-of-squares already broadcast over its lanes.
    qss = jnp.dot(q * q, grp, preferred_element_type=jnp.float32)
    kss = jnp.dot(k * k, grp, preferred_element_type=jnp.float32)
    # rsqrt(max(ssq, 1e-24)) == 1 / max(||.||, 1e-12) (F.normalize semantics);
    # the clamped per-head logit scale is folded into the q-side scale row.
    qn = q * jax.lax.rsqrt(jnp.maximum(qss, 1e-24)) \
           * consts_ref[O_VEC + 1:O_VEC + 2, 0:DIM]
    kn = k * jax.lax.rsqrt(jnp.maximum(kss, 1e-24))

    # --- batched-head window attention via lane-packed block-diagonal K / V ---
    # k_big[d, h*NTOK + j] = kn[j, d] iff d belongs to head h  (else 0)
    k_big = jnp.concatenate([kn.T] * NUM_HEADS, axis=1) * kmask     # (C, HTOK)
    s = jnp.dot(qn, k_big, preferred_element_type=jnp.float32)      # (NTOK, HTOK)
    s = s + rpbm                           # rel-pos bias + cross-window -1e30
    # Global row max == uniform shift within every head block -> per-head softmax
    # unchanged; scores are bounded (|cos|*scale + 16) so no overflow either way.
    s = s - jnp.max(s, axis=-1, keepdims=True)
    p = jnp.exp(s)                                                  # (NTOK, HTOK)

    # v_big[h*NTOK + j, d] = v[j, d] iff d belongs to head h  (else 0)
    v_big = jnp.concatenate([v] * NUM_HEADS, axis=0) * vmask        # (HTOK, C)
    ctx_un = jnp.dot(p, v_big, preferred_element_type=jnp.float32)  # (NTOK, C)
    # p @ vmask = per-head softmax denominators, broadcast across each head's lanes.
    denom = jnp.dot(p, vmask, preferred_element_type=jnp.float32)   # (NTOK, C)
    # approx reciprocal (EUP); use exact division if bit-matching PyTorch matters.
    ctx = ctx_un * pl.reciprocal(denom, approx=True)                # head-major (NTOK, C)

    # --- fused output projection ---
    attn_out = jnp.dot(ctx, wproj_ref[...], preferred_element_type=jnp.float32)
    attn_out = attn_out + consts_ref[O_VEC + 2:O_VEC + 3, 0:DIM]

    # --- residual 1 (SwinV2 post-norm) ---
    h1 = x + _layernorm(attn_out,
                        consts_ref[O_VEC + 3:O_VEC + 4, 0:DIM],
                        consts_ref[O_VEC + 4:O_VEC + 5, 0:DIM])

    # --- MLP: fc1 -> GELU(exact erf) -> fc2 ---
    m = jnp.dot(h1, wfc1_ref[...], preferred_element_type=jnp.float32)
    m = m + consts_ref[O_VEC + 5:O_VEC + 6, 0:MLP_HIDDEN]
    m = 0.5 * m * (1.0 + _erf(m * (1.0 / math.sqrt(2.0))))
    m = jnp.dot(m, wfc2_ref[...], preferred_element_type=jnp.float32)
    m = m + consts_ref[O_VEC + 6:O_VEC + 7, 0:DIM]

    # --- residual 2 (post-norm) ---
    out = h1 + _layernorm(m,
                          consts_ref[O_VEC + 7:O_VEC + 8, 0:DIM],
                          consts_ref[O_VEC + 8:O_VEC + 9, 0:DIM])
    o_ref[...] = out.astype(o_ref.dtype)


# ---- wrapper ----------------------------------------------------------------
def swin_block(x, kernel_args):
    B, L, C = x.shape
    assert L % WINDOW == 0 and C == DIM and B * L == NTOK
    # window-partition order == flat (b, l) order for 1-D windows
    x2d = x.reshape(B * L, C)
    out2d = pl.pallas_call(
        swin_block_kernel,
        out_shape=jax.ShapeDtypeStruct((B * L, C), x.dtype),
    )(x2d, *kernel_args)
    return out2d.reshape(B, L, C)


# ---- deterministic parameter init (shapes from the module __init__) ---------
def init_params(key):
    ks = jax.random.split(key, 12)
    s = 0.02
    p = {
        "qkv_w":       jax.random.normal(ks[0], (3 * DIM, DIM), jnp.float32) * s,
        "q_bias":      jax.random.normal(ks[1], (DIM,), jnp.float32) * s,
        "v_bias":      jax.random.normal(ks[2], (DIM,), jnp.float32) * s,
        "logit_scale": jnp.log(10.0 * jnp.ones((NUM_HEADS, 1, 1), jnp.float32)),
        "cpb_w1":      jax.random.normal(ks[3], (512, 1), jnp.float32) * s,
        "cpb_b1":      jax.random.normal(ks[4], (512,), jnp.float32) * s,
        "cpb_w2":      jax.random.normal(ks[5], (NUM_HEADS, 512), jnp.float32) * s,
        "proj_w":      jax.random.normal(ks[6], (DIM, DIM), jnp.float32) * s,
        "proj_b":      jax.random.normal(ks[7], (DIM,), jnp.float32) * s,
        "fc1_w":       jax.random.normal(ks[8], (MLP_HIDDEN, DIM), jnp.float32) * s,
        "fc1_b":       jax.random.normal(ks[9], (MLP_HIDDEN,), jnp.float32) * s,
        "fc2_w":       jax.random.normal(ks[10], (DIM, MLP_HIDDEN), jnp.float32) * s,
        "fc2_b":       jax.random.normal(ks[11], (DIM,), jnp.float32) * s,
        "norm1_w":     jnp.ones((DIM,), jnp.float32),
        "norm1_b":     jnp.zeros((DIM,), jnp.float32),
        "norm2_w":     jnp.ones((DIM,), jnp.float32),
        "norm2_b":     jnp.zeros((DIM,), jnp.float32),
    }
    return p


def prepare_kernel_args(p):
    ws, nh, hd, C = WINDOW, NUM_HEADS, HEAD_DIM, DIM

    # clamped per-head logit scale: exp(min(logit_scale, log(1/0.01))), folded into q
    scale = jnp.exp(jnp.minimum(p["logit_scale"].reshape(nh), math.log(1.0 / 0.01)))
    qscale_row = jnp.repeat(scale, hd)                                      # (C,)

    # relative position bias table via cpb_mlp (parameter-only glue, plain JAX)
    rel = jnp.arange(-(ws - 1), ws, dtype=jnp.float32)
    rel = rel / (ws - 1) * 8.0
    rel = jnp.sign(rel) * jnp.log2(jnp.abs(rel) + 1.0) / math.log2(8.0)
    table_in = rel[:, None]                                                 # (2ws-1, 1)
    hidm = jnp.maximum(table_in @ p["cpb_w1"].T + p["cpb_b1"], 0.0)         # (2ws-1, 512)
    table = hidm @ p["cpb_w2"].T                                            # (2ws-1, nh)
    coords = jnp.arange(ws)
    rel_idx = coords[:, None] - coords[None, :] + (ws - 1)                  # (ws, ws)
    rpb = table[rel_idx.reshape(-1)].reshape(ws, ws, nh).transpose(2, 0, 1)
    rpb = 16.0 * jax.nn.sigmoid(rpb)                                        # (nh, ws, ws)

    # expand to all tokens (bias inside each window, -1e30 across windows) and lay it
    # out lane-dense to match the packed (NTOK, nh*NTOK) score matrix.
    tok = jnp.arange(NTOK)
    same_win = (tok[:, None] // ws) == (tok[None, :] // ws)                 # (NTOK, NTOK)
    pos_i = tok[:, None] % ws
    pos_j = tok[None, :] % ws
    rpb_full = rpb[:, pos_i, pos_j]                                         # (nh, NTOK, NTOK)
    rpbm = jnp.where(same_win[None, :, :], rpb_full, NEG_INF)
    rpbm_lane = rpbm.transpose(1, 0, 2).reshape(NTOK, HTOK).astype(jnp.float32)

    # head-structure masks (precomputed; were in-kernel iotas before)
    dim_head = jnp.arange(C) // hd                                          # (C,)
    col_head = jnp.arange(HTOK) // NTOK                                     # (HTOK,)
    kmask = (dim_head[:, None] == col_head[None, :]).astype(jnp.float32)    # (C, HTOK)
    vmask = (col_head[:, None] == dim_head[None, :]).astype(jnp.float32)    # (HTOK, C)
    grp = (dim_head[:, None] == dim_head[None, :]).astype(jnp.float32)      # (C, C)

    # packed matmul weights (transposed for x @ W)
    wqkv = p["qkv_w"].T                   # (C, 3C), columns = [q | k | v], head-major
    wproj = p["proj_w"].T                 # (C, C)
    wfc1 = p["fc1_w"].T                   # (C, MLP_HIDDEN)
    wfc2 = p["fc2_w"].T                   # (MLP_HIDDEN, C)

    # single (128, 128) constant slab: masks + rpb + all 1-D parameters
    qkv_bias = jnp.concatenate(
        [p["q_bias"], jnp.zeros((C,), jnp.float32), p["v_bias"]])           # (3C,)
    consts = jnp.zeros((128, 128), jnp.float32)
    consts = consts.at[O_KMASK:O_KMASK + C, :].set(kmask)
    consts = consts.at[O_RPBM:O_RPBM + NTOK, :].set(rpbm_lane)
    consts = consts.at[O_GRP:O_GRP + C, :C].set(grp)
    consts = consts.at[O_VEC + 0, :3 * C].set(qkv_bias)
    consts = consts.at[O_VEC + 1, :C].set(qscale_row)
    consts = consts.at[O_VEC + 2, :C].set(p["proj_b"])
    consts = consts.at[O_VEC + 3, :C].set(p["norm1_w"])
    consts = consts.at[O_VEC + 4, :C].set(p["norm1_b"])
    consts = consts.at[O_VEC + 5, :MLP_HIDDEN].set(p["fc1_b"])
    consts = consts.at[O_VEC + 6, :C].set(p["fc2_b"])
    consts = consts.at[O_VEC + 7, :C].set(p["norm2_w"])
    consts = consts.at[O_VEC + 8, :C].set(p["norm2_b"])

    return (wqkv, wproj, wfc1, wfc2, consts, vmask)


if __name__ == "__main__":
    key = jax.random.PRNGKey(0)
    pkey, xkey = jax.random.split(key)
    params = init_params(pkey)
    kernel_args = prepare_kernel_args(params)

    x = jax.random.normal(xkey, (BATCH, SEQ, DIM), jnp.float32)

    out = swin_block(x, kernel_args)
    out = jax.block_until_ready(out)

    assert out.shape == (BATCH, SEQ, DIM)
    assert out.dtype == jnp.float32
    assert bool(jnp.all(jnp.isfinite(out)))
    print("KERNEL_OK")
</pallas_src>

<mosaic_0001>
module attributes {stable_mosaic.version = 11 : i64} {
  func.func @swin_block_kernel(%arg0: memref<32x32xf32, #tpu.memory_space<vmem>>, %arg1: memref<32x96xf32, #tpu.memory_space<vmem>>, %arg2: memref<32x32xf32, #tpu.memory_space<vmem>>, %arg3: memref<32x128xf32, #tpu.memory_space<vmem>>, %arg4: memref<128x32xf32, #tpu.memory_space<vmem>>, %arg5: memref<128x128xf32, #tpu.memory_space<vmem>>, %arg6: memref<128x32xf32, #tpu.memory_space<vmem>>, %arg7: memref<32x32xf32, #tpu.memory_space<vmem>>) attributes {dimension_semantics = [], scalar_prefetch = 0 : i64, scratch_operands = 0 : i64, tpu.core_type = #tpu.core_type<tc>} {
    %c0 = arith.constant 0 : index
    %c0_0 = arith.constant 0 : index
    %0 = vector.load %arg0[%c0, %c0_0] : memref<32x32xf32, #tpu.memory_space<vmem>>, vector<32x32xf32>
    %c0_1 = arith.constant 0 : index
    %c0_2 = arith.constant 0 : index
    %1 = vector.load %arg5[%c0_1, %c0_2] : memref<128x128xf32, #tpu.memory_space<vmem>>, vector<32x128xf32>
    %c32 = arith.constant 32 : index
    %c0_3 = arith.constant 0 : index
    %2 = vector.load %arg5[%c32, %c0_3] : memref<128x128xf32, #tpu.memory_space<vmem>>, vector<32x128xf32>
    %c64 = arith.constant 64 : index
    %c0_4 = arith.constant 0 : index
    %3 = vector.load %arg5[%c64, %c0_4] : memref<128x128xf32, #tpu.memory_space<vmem>>, vector<32x32xf32>
    %c0_5 = arith.constant 0 : index
    %c0_6 = arith.constant 0 : index
    %4 = vector.load %arg6[%c0_5, %c0_6] : memref<128x32xf32, #tpu.memory_space<vmem>>, vector<128x32xf32>
    %c0_7 = arith.constant 0 : index
    %c0_8 = arith.constant 0 : index
    %5 = vector.load %arg1[%c0_7, %c0_8] : memref<32x96xf32, #tpu.memory_space<vmem>>, vector<32x96xf32>
    %cst = arith.constant dense<0.000000e+00> : vector<32x96xf32>
    %6 = tpu.matmul %0, %5, %cst {dimension_numbers = #tpu.dot_dimension_numbers<[1], [0], [0], [1], [0, 0, 1, 1], [], []>} : vector<32x32xf32>, vector<32x96xf32>, vector<32x96xf32> -> vector<32x96xf32>
    %c96 = arith.constant 96 : index
    %c0_9 = arith.constant 0 : index
    %7 = vector.load %arg5[%c96, %c0_9] : memref<128x128xf32, #tpu.memory_space<vmem>>, vector<1x96xf32>
    %8 = vector.broadcast %7 : vector<1x96xf32> to vector<32x96xf32>
    %9 = arith.addf %6, %8 : vector<32x96xf32>
    %10 = vector.extract_strided_slice %9 {offsets = [0, 0], sizes = [32, 32], strides = [1, 1]} : vector<32x96xf32> to vector<32x32xf32>
    %11 = vector.extract_strided_slice %9 {offsets = [0, 32], sizes = [32, 32], strides = [1, 1]} : vector<32x96xf32> to vector<32x32xf32>
    %12 = vector.extract_strided_slice %9 {offsets = [0, 64], sizes = [32, 32], strides = [1, 1]} : vector<32x96xf32> to vector<32x32xf32>
    %13 = arith.mulf %10, %10 : vector<32x32xf32>
    %cst_10 = arith.constant dense<0.000000e+00> : vector<32x32xf32>
    %14 = tpu.matmul %13, %3, %cst_10 {dimension_numbers = #tpu.dot_dimension_numbers<[1], [0], [0], [1], [0, 0, 1, 1], [], []>} : vector<32x32xf32>, vector<32x32xf32>, vector<32x32xf32> -> vector<32x32xf32>
    %15 = arith.mulf %11, %11 : vector<32x32xf32>
    %cst_11 = arith.constant dense<0.000000e+00> : vector<32x32xf32>
    %16 = tpu.matmul %15, %3, %cst_11 {dimension_numbers = #tpu.dot_dimension_numbers<[1], [0], [0], [1], [0, 0, 1, 1], [], []>} : vector<32x32xf32>, vector<32x32xf32>, vector<32x32xf32> -> vector<32x32xf32>
    %cst_12 = arith.constant 1.000000e-24 : f32
    %17 = vector.broadcast %cst_12 : f32 to vector<32x32xf32>
    %18 = arith.maximumf %14, %17 : vector<32x32xf32>
    %19 = math.rsqrt %18 : vector<32x32xf32>
    %20 = arith.mulf %10, %19 : vector<32x32xf32>
    %c97 = arith.constant 97 : index
    %c0_13 = arith.constant 0 : index
    %21 = vector.load %arg5[%c97, %c0_13] : memref<128x128xf32, #tpu.memory_space<vmem>>, vector<1x32xf32>
    %22 = vector.broadcast %21 : vector<1x32xf32> to vector<32x32xf32>
    %23 = arith.mulf %20, %22 : vector<32x32xf32>
    %cst_14 = arith.constant 1.000000e-24 : f32
    %24 = vector.broadcast %cst_14 : f32 to vector<32x32xf32>
    %25 = arith.maximumf %16, %24 : vector<32x32xf32>
    %26 = math.rsqrt %25 : vector<32x32xf32>
    %27 = arith.mulf %11, %26 : vector<32x32xf32>
    %28 = tpu.transpose %27, [1, 0] : vector<32x32xf32> -> vector<32x32xf32>
    %29 = tpu.concatenate %28, %28, %28, %28 in 1 : vector<32x32xf32>, vector<32x32xf32>, vector<32x32xf32>, vector<32x32xf32> -> vector<32x128xf32>
    %30 = arith.mulf %29, %1 : vector<32x128xf32>
    %cst_15 = arith.constant dense<0.000000e+00> : vector<32x128xf32>
    %31 = tpu.matmul %23, %30, %cst_15 {dimension_numbers = #tpu.dot_dimension_numbers<[1], [0], [0], [1], [0, 0, 1, 1], [], []>} : vector<32x32xf32>, vector<32x128xf32>, vector<32x128xf32> -> vector<32x128xf32>
    %32 = arith.addf %31, %2 : vector<32x128xf32>
    %cst_16 = arith.constant dense<0xFF800000> : vector<32xf32>
    %33 = vector.multi_reduction <maximumf>, %32, %cst_16 [1] : vector<32x128xf32> to vector<32xf32>
    %34 = vector.shape_cast %33 : vector<32xf32> to vector<32x1xf32>
    %35 = vector.broadcast %34 : vector<32x1xf32> to vector<32x128xf32>
    %36 = arith.subf %32, %35 : vector<32x128xf32>
    %37 = math.exp %36 : vector<32x128xf32>
    %38 = tpu.concatenate %12, %12, %12, %12 in 0 : vector<32x32xf32>, vector<32x32xf32>, vector<32x32xf32>, vector<32x32xf32> -> vector<128x32xf32>
    %39 = arith.mulf %38, %4 : vector<128x32xf32>
    %cst_17 = arith.constant dense<0.000000e+00> : vector<32x32xf32>
    %40 = tpu.matmul %37, %39, %cst_17 {dimension_numbers = #tpu.dot_dimension_numbers<[1], [0], [0], [1], [0, 0, 1, 1], [], []>} : vector<32x128xf32>, vector<128x32xf32>, vector<32x32xf32> -> vector<32x32xf32>
    %cst_18 = arith.constant dense<0.000000e+00> : vector<32x32xf32>
    %41 = tpu.matmul %37, %4, %cst_18 {dimension_numbers = #tpu.dot_dimension_numbers<[1], [0], [0], [1], [0, 0, 1, 1], [], []>} : vector<32x128xf32>, vector<128x32xf32>, vector<32x32xf32> -> vector<32x32xf32>
    %42 = tpu.reciprocal %41 {approx = true} : vector<32x32xf32> -> vector<32x32xf32>
    %43 = arith.mulf %40, %42 : vector<32x32xf32>
    %c0_19 = arith.constant 0 : index
    %c0_20 = arith.constant 0 : index
    %44 = vector.load %arg2[%c0_19, %c0_20] : memref<32x32xf32, #tpu.memory_space<vmem>>, vector<32x32xf32>
    %cst_21 = arith.constant dense<0.000000e+00> : vector<32x32xf32>
    %45 = tpu.matmul %43, %44, %cst_21 {dimension_numbers = #tpu.dot_dimension_numbers<[1], [0], [0], [1], [0, 0, 1, 1], [], []>} : vector<32x32xf32>, vector<32x32xf32>, vector<32x32xf32> -> vector<32x32xf32>
    %c98 = arith.constant 98 : index
    %c0_22 = arith.constant 0 : index
    %46 = vector.load %arg5[%c98, %c0_22] : memref<128x128xf32, #tpu.memory_space<vmem>>, vector<1x32xf32>
    %47 = vector.broadcast %46 : vector<1x32xf32> to vector<32x32xf32>
    %48 = arith.addf %45, %47 : vector<32x32xf32>
    %c99 = arith.constant 99 : index
    %c0_23 = arith.constant 0 : index
    %49 = vector.load %arg5[%c99, %c0_23] : memref<128x128xf32, #tpu.memory_space<vmem>>, vector<1x32xf32>
    %c100 = arith.constant 100 : index
    %c0_24 = arith.constant 0 : index
    %50 = vector.load %arg5[%c100, %c0_24] : memref<128x128xf32, #tpu.memory_space<vmem>>, vector<1x32xf32>
    %cst_25 = arith.constant dense<0.000000e+00> : vector<32xf32>
    %51 = vector.multi_reduction <add>, %48, %cst_25 [1] : vector<32x32xf32> to vector<32xf32>
    %52 = vector.shape_cast %51 : vector<32xf32> to vector<32x1xf32>
    %cst_26 = arith.constant 3.200000e+01 : f32
    %53 = vector.broadcast %cst_26 : f32 to vector<32x1xf32>
    %54 = arith.divf %52, %53 : vector<32x1xf32>
    %55 = vector.broadcast %54 : vector<32x1xf32> to vector<32x32xf32>
    %56 = arith.subf %48, %55 : vector<32x32xf32>
    %57 = arith.mulf %56, %56 : vector<32x32xf32>
    %cst_27 = arith.constant dense<0.000000e+00> : vector<32xf32>
    %58 = vector.multi_reduction <add>, %57, %cst_27 [1] : vector<32x32xf32> to vector<32xf32>
    %59 = vector.shape_cast %58 : vector<32xf32> to vector<32x1xf32>
    %cst_28 = arith.constant 3.200000e+01 : f32
    %60 = vector.broadcast %cst_28 : f32 to vector<32x1xf32>
    %61 = arith.divf %59, %60 : vector<32x1xf32>
    %cst_29 = arith.constant 9.99999974E-6 : f32
    %62 = vector.broadcast %cst_29 : f32 to vector<32x1xf32>
    %63 = arith.addf %61, %62 : vector<32x1xf32>
    %64 = math.rsqrt %63 : vector<32x1xf32>
    %65 = vector.broadcast %64 : vector<32x1xf32> to vector<32x32xf32>
    %66 = arith.mulf %56, %65 : vector<32x32xf32>
    %67 = vector.broadcast %49 : vector<1x32xf32> to vector<32x32xf32>
    %68 = arith.mulf %66, %67 : vector<32x32xf32>
    %69 = vector.broadcast %50 : vector<1x32xf32> to vector<32x32xf32>
    %70 = arith.addf %68, %69 : vector<32x32xf32>
    %71 = arith.addf %0, %70 : vector<32x32xf32>
    %c0_30 = arith.constant 0 : index
    %c0_31 = arith.constant 0 : index
    %72 = vector.load %arg3[%c0_30, %c0_31] : memref<32x128xf32, #tpu.memory_space<vmem>>, vector<32x128xf32>
    %cst_32 = arith.constant dense<0.000000e+00> : vector<32x128xf32>
    %73 = tpu.matmul %71, %72, %cst_32 {dimension_numbers = #tpu.dot_dimension_numbers<[1], [0], [0], [1], [0, 0, 1, 1], [], []>} : vector<32x32xf32>, vector<32x128xf32>, vector<32x128xf32> -> vector<32x128xf32>
    %c101 = arith.constant 101 : index
    %c0_33 = arith.constant 0 : index
    %74 = vector.load %arg5[%c101, %c0_33] : memref<128x128xf32, #tpu.memory_space<vmem>>, vector<1x128xf32>
    %75 = vector.broadcast %74 : vector<1x128xf32> to vector<32x128xf32>
    %76 = arith.addf %73, %75 : vector<32x128xf32>
    %cst_34 = arith.constant 5.000000e-01 : f32
    %77 = vector.broadcast %cst_34 : f32 to vector<32x128xf32>
    %78 = arith.mulf %77, %76 : vector<32x128xf32>
    %cst_35 = arith.constant 0.707106769 : f32
    %79 = vector.broadcast %cst_35 : f32 to vector<32x128xf32>
    %80 = arith.mulf %76, %79 : vector<32x128xf32>
    %81 = math.absf %80 : vector<32x128xf32>
    %cst_36 = arith.constant 5.000000e-01 : f32
    %82 = vector.broadcast %cst_36 : f32 to vector<32x128xf32>
    %83 = arith.mulf %82, %81 : vector<32x128xf32>
    %cst_37 = arith.constant 1.000000e+00 : f32
    %84 = vector.broadcast %cst_37 : f32 to vector<32x128xf32>
    %85 = arith.addf %84, %83 : vector<32x128xf32>
    %cst_38 = arith.constant 1.000000e+00 : f32
    %86 = vector.broadcast %cst_38 : f32 to vector<32x128xf32>
    %87 = arith.divf %86, %85 : vector<32x128xf32>
    %cst_39 = arith.constant 0.170872763 : f32
    %88 = vector.broadcast %cst_39 : f32 to vector<32x128xf32>
    %89 = arith.mulf %87, %88 : vector<32x128xf32>
    %cst_40 = arith.constant -0.822152256 : f32
    %90 = vector.broadcast %cst_40 : f32 to vector<32x128xf32>
    %91 = arith.addf %90, %89 : vector<32x128xf32>
    %92 = arith.mulf %87, %91 : vector<32x128xf32>
    %cst_41 = arith.constant 1.48851585 : f32
    %93 = vector.broadcast %cst_41 : f32 to vector<32x128xf32>
    %94 = arith.addf %93, %92 : vector<32x128xf32>
    %95 = arith.mulf %87, %94 : vector<32x128xf32>
    %cst_42 = arith.constant -1.13520396 : f32
    %96 = vector.broadcast %cst_42 : f32 to vector<32x128xf32>
    %97 = arith.addf %96, %95 : vector<32x128xf32>
    %98 = arith.mulf %87, %97 : vector<32x128xf32>
    %cst_43 = arith.constant 0.278868079 : f32
    %99 = vector.broadcast %cst_43 : f32 to vector<32x128xf32>
    %100 = arith.addf %99, %98 : vector<32x128xf32>
    %101 = arith.mulf %87, %100 : vector<32x128xf32>
    %cst_44 = arith.constant -0.186288059 : f32
    %102 = vector.broadcast %cst_44 : f32 to vector<32x128xf32>
    %103 = arith.addf %102, %101 : vector<32x128xf32>
    %104 = arith.mulf %87, %103 : vector<32x128xf32>
    %cst_45 = arith.constant 0.0967841818 : f32
    %105 = vector.broadcast %cst_45 : f32 to vector<32x128xf32>
    %106 = arith.addf %105, %104 : vector<32x128xf32>
    %107 = arith.mulf %87, %106 : vector<32x128xf32>
    %cst_46 = arith.constant 0.374091953 : f32
    %108 = vector.broadcast %cst_46 : f32 to vector<32x128xf32>
    %109 = arith.addf %108, %107 : vector<32x128xf32>
    %110 = arith.mulf %87, %109 : vector<32x128xf32>
    %cst_47 = arith.constant 1.00002372 : f32
    %111 = vector.broadcast %cst_47 : f32 to vector<32x128xf32>
    %112 = arith.addf %111, %110 : vector<32x128xf32>
    %113 = arith.mulf %87, %112 : vector<32x128xf32>
    %cst_48 = arith.constant -1.26551223 : f32
    %114 = vector.broadcast %cst_48 : f32 to vector<32x128xf32>
    %115 = arith.addf %114, %113 : vector<32x128xf32>
    %cst_49 = arith.constant 0.000000e+00 : f32
    %116 = vector.broadcast %cst_49 : f32 to vector<32x128xf32>
    %117 = arith.subf %116, %81 : vector<32x128xf32>
    %118 = arith.mulf %117, %81 : vector<32x128xf32>
    %119 = arith.addf %118, %115 : vector<32x128xf32>
    %120 = math.exp %119 : vector<32x128xf32>
    %121 = arith.mulf %87, %120 : vector<32x128xf32>
    %cst_50 = arith.constant 1.000000e+00 : f32
    %122 = vector.broadcast %cst_50 : f32 to vector<32x128xf32>
    %123 = arith.subf %122, %121 : vector<32x128xf32>
    %cst_51 = arith.constant 0.000000e+00 : f32
    %124 = vector.broadcast %cst_51 : f32 to vector<32x128xf32>
    %125 = arith.cmpf oge, %80, %124 : vector<32x128xf32>
    %cst_52 = arith.constant 0.000000e+00 : f32
    %126 = vector.broadcast %cst_52 : f32 to vector<32x128xf32>
    %127 = arith.subf %126, %123 : vector<32x128xf32>
    %128 = arith.select %125, %123, %127 : vector<32x128xi1>, vector<32x128xf32>
    %cst_53 = arith.constant 1.000000e+00 : f32
    %129 = vector.broadcast %cst_53 : f32 to vector<32x128xf32>
    %130 = arith.addf %129, %128 : vector<32x128xf32>
    %131 = arith.mulf %78, %130 : vector<32x128xf32>
    %c0_54 = arith.constant 0 : index
    %c0_55 = arith.constant 0 : index
    %132 = vector.load %arg4[%c0_54, %c0_55] : memref<128x32xf32, #tpu.memory_space<vmem>>, vector<128x32xf32>
    %cst_56 = arith.constant dense<0.000000e+00> : vector<32x32xf32>
    %133 = tpu.matmul %131, %132, %cst_56 {dimension_numbers = #tpu.dot_dimension_numbers<[1], [0], [0], [1], [0, 0, 1, 1], [], []>} : vector<32x128xf32>, vector<128x32xf32>, vector<32x32xf32> -> vector<32x32xf32>
    %c102 = arith.constant 102 : index
    %c0_57 = arith.constant 0 : index
    %134 = vector.load %arg5[%c102, %c0_57] : memref<128x128xf32, #tpu.memory_space<vmem>>, vector<1x32xf32>
    %135 = vector.broadcast %134 : vector<1x32xf32> to vector<32x32xf32>
    %136 = arith.addf %133, %135 : vector<32x32xf32>
    %c103 = arith.constant 103 : index
    %c0_58 = arith.constant 0 : index
    %137 = vector.load %arg5[%c103, %c0_58] : memref<128x128xf32, #tpu.memory_space<vmem>>, vector<1x32xf32>
    %c104 = arith.constant 104 : index
    %c0_59 = arith.constant 0 : index
    %138 = vector.load %arg5[%c104, %c0_59] : memref<128x128xf32, #tpu.memory_space<vmem>>, vector<1x32xf32>
    %cst_60 = arith.constant dense<0.000000e+00> : vector<32xf32>
    %139 = vector.multi_reduction <add>, %136, %cst_60 [1] : vector<32x32xf32> to vector<32xf32>
    %140 = vector.shape_cast %139 : vector<32xf32> to vector<32x1xf32>
    %cst_61 = arith.constant 3.200000e+01 : f32
    %141 = vector.broadcast %cst_61 : f32 to vector<32x1xf32>
    %142 = arith.divf %140, %141 : vector<32x1xf32>
    %143 = vector.broadcast %142 : vector<32x1xf32> to vector<32x32xf32>
    %144 = arith.subf %136, %143 : vector<32x32xf32>
    %145 = arith.mulf %144, %144 : vector<32x32xf32>
    %cst_62 = arith.constant dense<0.000000e+00> : vector<32xf32>
    %146 = vector.multi_reduction <add>, %145, %cst_62 [1] : vector<32x32xf32> to vector<32xf32>
    %147 = vector.shape_cast %146 : vector<32xf32> to vector<32x1xf32>
    %cst_63 = arith.constant 3.200000e+01 : f32
    %148 = vector.broadcast %cst_63 : f32 to vector<32x1xf32>
    %149 = arith.divf %147, %148 : vector<32x1xf32>
    %cst_64 = arith.constant 9.99999974E-6 : f32
    %150 = vector.broadcast %cst_64 : f32 to vector<32x1xf32>
    %151 = arith.addf %149, %150 : vector<32x1xf32>
    %152 = math.rsqrt %151 : vector<32x1xf32>
    %153 = vector.broadcast %152 : vector<32x1xf32> to vector<32x32xf32>
    %154 = arith.mulf %144, %153 : vector<32x32xf32>
    %155 = vector.broadcast %137 : vector<1x32xf32> to vector<32x32xf32>
    %156 = arith.mulf %154, %155 : vector<32x32xf32>
    %157 = vector.broadcast %138 : vector<1x32xf32> to vector<32x32xf32>
    %158 = arith.addf %156, %157 : vector<32x32xf32>
    %159 = arith.addf %71, %158 : vector<32x32xf32>
    %c0_65 = arith.constant 0 : index
    %c0_66 = arith.constant 0 : index
    %160 = vector.load %arg7[%c0_65, %c0_66] : memref<32x32xf32, #tpu.memory_space<vmem>>, vector<32x32xf32>
    tpu.vector_store %arg7[%c0_65, %c0_66], %159 {strides = array<i32>} : memref<32x32xf32, #tpu.memory_space<vmem>>, vector<32x32xf32>,
    return
  }
}

</mosaic_0001>

<bundles_post_ra>
// kernel: tpu_custom_call.1
= control target key start
LH: loop header
LB: loop body
LE: loop exit
PB: predicated region body
PF: predicated region fallthrough
CT: control target
= control target key end

     0   :  { %vm65_vm0 = vcmask 261120   ;;  %s2112_s0 = inlined_call_operand.vmem [shape: f32[32,32], index: 0, kind: input, shape index: {}]   ;;  %s2113_s1 = inlined_call_operand.vmem [shape: f32[32,96], index: 1, kind: input, shape index: {}]   ;;  %s2114_s2 = inlined_call_operand.vmem [shape: f32[32,32], index: 2, kind: input, shape index: {}]   ;;  %s2115_s3 = inlined_call_operand.vmem [shape: f32[32,128], index: 3, kind: input, shape index: {}]   ;;  %s2116_s4 = inlined_call_operand.vmem [shape: f32[128,32], index: 4, kind: input, shape index: {}]   ;;  %s2117_s5 = inlined_call_operand.vmem [shape: f32[128,128], index: 5, kind: input, shape index: {}]   ;;  %s2118_s6 = inlined_call_operand.vmem [shape: f32[128,32], index: 6, kind: input, shape index: {}]   ;;  %s2119_s7 = inlined_call_operand.hbm [shape: f32[32,32], index: 7, kind: output, shape index: {}]  }
   0x1   :  { %v62_v0 = vld [vmem:[%s2113_s1 + $0x18] sm:$0xff]  ;;  %v61_v1 = vld [vmem:[%s2113_s1 + $0x10] sm:$0xff]  ;;  %v60_v2 = vld [vmem:[%s2113_s1 + $0x8] sm:$0xff] }
   0x2   :  { %90 = vmatpush.msra.mxu0 %v62_v0  ;;  %v59_v3 = vld [vmem:[%s2113_s1] sm:$0xff]  ;;  %v42_v4 = vld [vmem:[%s2117_s5 + $0x58] sm:$0xff] }
   0x3   :  { %v27_v5 = vld [vmem:[%s2112_s0] sm:$0xff]  ;;  %135 = vmatpush.msra.mxu1 %v42_v4  ;;  %180 = vmatpush.msra.mxu2 %v42_v4 }
   0x4   :  { %91 = vmatpush.msra.mxu0 %v61_v1  ;;  %1294 = vmatpush.msra.mxu3 %v42_v4 }
   0x6   :  { %92 = vmatpush.msra.mxu0 %v60_v2 }
   0x7   :  { %12 = vsyncpa [#allocation3], 0  ;;  %v28_v6 = vld [vmem:[%s2112_s0 + $0x8] sm:$0xff]  ;;  %v29_v7 = vld [vmem:[%s2112_s0 + $0x10] sm:$0xff]  ;;  %s1483_s26 = smov 96   ;;  %s1484_s27 = smov 32  }
   0x8   :  { %93 = vmatpush.msra.mxu0 %v59_v3  ;;  %v30_v8 = vld [vmem:[%s2112_s0 + $0x18] sm:$0xff]  ;;  %v41_v9 = vld [vmem:[%s2117_s5 + $0x50] sm:$0xff]  ;;  %v40_v10 = vld [vmem:[%s2117_s5 + $0x48] sm:$0xff]  ;;  %s1485_s30 = smov 64   ;;  %vm407_vm14 = vcmask 523264   ;;  %vm412_vm15 = vcmask 785408  }
   0x9   :  { %1270 = vmatmul.msk.f32.vlgmr.msra.gmra.mxu0 %vm65_vm0, %v27_v5  ;;  %136 = vmatpush.msra.mxu1 %v41_v9  ;;  %v39_v11 = vld [vmem:[%s2117_s5 + $0x40] sm:$0xff]  ;;  %s1258_s21 = sshll.u32 %s2119_s7, 4  ;;  %s1488_s22 = smov 128   ;;  %s1259_s21 = int_to_ptr.hbm [resolvable:$true] %s1258_s21 }
   0xa   :  { %181 = vmatpush.msra.mxu2 %v41_v9  ;;  %1295 = vmatpush.msra.mxu3 %v41_v9  ;;  %v1378_v12 = vld [vmem:[%s2117_s5 + $0x60] ss:$0 sm:$0xff] }
   0xb   :  { %137 = vmatpush.msra.mxu1 %v40_v10 }
   0xc   :  { %182 = vmatpush.msra.mxu2 %v40_v10  ;;  %1296 = vmatpush.msra.mxu3 %v40_v10 }
   0xd   :  { %138 = vmatpush.msra.mxu1 %v39_v11 }
   0xe   :  { %183 = vmatpush.msra.mxu2 %v39_v11  ;;  %1297 = vmatpush.msra.mxu3 %v39_v11 }
  0x11   :  { %1271 = vmatmul.msk.f32.gmra.mxu0 %vm65_vm0, %v28_v6 }
  0x19   :  { %1272 = vmatmul.msk.f32.gmra.mxu0 %vm65_vm0, %v29_v7 }
  0x21   :  { %1273 = vmatmul.msk.f32.gmra.mxu0 %vm65_vm0, %v30_v8 }
  0x86   :  { %v95_v13 = vpop.f32.mrf.mxu0 }
  0x87   :  { %v1573_v14 = vadd.f32 %v1378_v12, %v95_v13  ;;  %v54_v13 = vld [vmem:[%s2118_s6 + $0x58] sm:$0xff] }
  0x89   :  { %v107_v15 = vmul.f32 %v1573_v14, %v1573_v14 }
  0x8b   :  { %152 = vrot.lane.b32.xlu0 %v107_v15, %s1483_s26  ;;  %1274 = vmatmul.msk.f32.vlgmr.msra.gmra.mxu1 %vm65_vm0, %v107_v15 }
  0x8e   :  { %v98_v16 = vpop.f32.mrf.mxu0 }
  0x8f   :  { %v1579_v17 = vadd.f32 %v1378_v12, %v98_v16 }
  0x91   :  { %v108_v18 = vmul.f32 %v1579_v17, %v1579_v17 }
  0x93   :  { %154 = vrot.lane.b32.xlu0 %v108_v18, %s1483_s26  ;;  %1275 = vmatmul.msk.f32.gmra.mxu1 %vm65_vm0, %v108_v18 }
  0x96   :  { %v101_v19 = vpop.f32.mrf.mxu0 }
  0x97   :  { %v1585_v20 = vadd.f32 %v1378_v12, %v101_v19  ;;  %v58_v19 = vld [vmem:[%s2118_s6 + $0x78] sm:$0xff] }
  0x98   :  { %655 = vmatpush.msrb.mxu1 %v58_v19 }
  0x99   :  { %v109_v21 = vmul.f32 %v1585_v20, %v1585_v20 }
  0x9b   :  { %156 = vrot.lane.b32.xlu1 %v109_v21, %s1483_s26  ;;  %1276 = vmatmul.msk.f32.gmra.mxu1 %vm65_vm0, %v109_v21  ;;  %v57_v21 = vld [vmem:[%s2118_s6 + $0x70] sm:$0xff] }
  0x9c   :  { %656 = vmatpush.msrb.mxu1 %v57_v21 }
  0x9e   :  { %v104_v22 = vpop.f32.mrf.mxu0 }
  0x9f   :  { %v1591_v23 = vadd.f32 %v1378_v12, %v104_v22 }
  0xa1   :  { %v110_v24 = vmul.f32 %v1591_v23, %v1591_v23 }
  0xa3   :  { %158 = vrot.lane.b32.xlu1 %v110_v24, %s1483_s26  ;;  %1277 = vmatmul.msk.f32.gmra.mxu1 %vm65_vm0, %v110_v24  ;;  %v56_v24 = vld [vmem:[%s2118_s6 + $0x68] sm:$0xff] }
  0xa4   :  { %657 = vmatpush.msrb.mxu1 %v56_v24 }
  0xfd   :  { %v153_v25 = vpop.permute.xlu0 %152 }
  0xfe   :  { %1278 = vmatmul.msk.f32.vlgmr.msra.gmra.mxu2 %vm65_vm0, %v153_v25  ;;  %v55_v25 = vld [vmem:[%s2118_s6 + $0x60] sm:$0xff] }
  0xff   :  { %658 = vmatpush.msrb.mxu1 %v55_v25 }
 0x101   :  { %659 = vmatpush.msrb.mxu1 %v54_v13 }
 0x105   :  { %v155_v26 = vpop.permute.xlu0 %154 }
 0x106   :  { %1279 = vmatmul.msk.f32.gmra.mxu2 %vm65_vm0, %v155_v26  ;;  %v53_v26 = vld [vmem:[%s2118_s6 + $0x50] sm:$0xff] }
 0x107   :  { %660 = vmatpush.msrb.mxu1 %v53_v26 }
 0x10d   :  { %v157_v27 = vpop.permute.xlu1 %156 }
 0x10e   :  { %1280 = vmatmul.msk.f32.gmra.mxu2 %vm65_vm0, %v157_v27  ;;  %v52_v27 = vld [vmem:[%s2118_s6 + $0x48] sm:$0xff] }
 0x10f   :  { %661 = vmatpush.msrb.mxu1 %v52_v27 }
 0x115   :  { %v159_v28 = vpop.permute.xlu1 %158 }
 0x116   :  { %1281 = vmatmul.msk.f32.vlgmr.msra.gmra.mxu3 %vm65_vm0, %v159_v28  ;;  %v51_v28 = vld [vmem:[%s2118_s6 + $0x40] sm:$0xff] }
 0x117   :  { %662 = vmatpush.msrb.mxu1 %v51_v28 }
 0x181   :  { %v185_v29 = vpop.f32.mrf.mxu2 }
 0x182   :  { %v251_v30 = vmax.f32 %v185_v29, 1e-24  ;;  %v50_v29 = vld [vmem:[%s2118_s6 + $0x38] sm:$0xff] }
 0x183   :  { %663 = vmatpush.msrb.mxu1 %v50_v29 }
 0x184   :  { %1387 = vrsqrt.f32 %v251_v30  ;;  %vm261_vm2 = vweird.f32 %v251_v30 }
 0x189   :  { %v188_v31 = vpop.f32.mrf.mxu2 }
 0x18a   :  { %v1388_v32 = vpop.eup %1387  ;;  %v252_v33 = vmax.f32 %v188_v31, 1e-24  ;;  %v48_v31 = vld [vmem:[%s2118_s6 + $0x28] sm:$0xff] }
 0x18b   :  { %v256_v34 = vmul.f32 %v1388_v32, %v251_v30  ;;  %vm262_vm1 = vweird.f32 %v1388_v32  ;;  %v49_v30 = vld [vmem:[%s2118_s6 + $0x30] sm:$0xff] }
 0x18c   :  { %1389 = vrsqrt.f32 %v252_v33  ;;  %vm263_vm3 = vmor %vm261_vm2, %vm262_vm1  ;;  %vm271_vm5 = vweird.f32 %v252_v33  ;;  %664 = vmatpush.msrb.mxu1 %v49_v30 }
 0x18d   :  { %v257_v35 = vmul.f32 %v1388_v32, %v256_v34  ;;  %v45_v34 = vld [vmem:[%s2118_s6 + $0x10] sm:$0xff] }
 0x18e   :  { %665 = vmatpush.msrb.mxu1 %v48_v31 }
 0x18f   :  { %v258_v36 = vmul.f32 0.5, %v257_v35  ;;  %v44_v35 = vld [vmem:[%s2118_s6 + $0x8] sm:$0xff] }
 0x191   :  { %v191_v37 = vpop.f32.mrf.mxu2  ;;  %v259_v38 = vsub.f32 1.5, %v258_v36  ;;  %v43_v36 = vld [vmem:[%s2118_s6] sm:$0xff] }
 0x192   :  { %v1390_v39 = vpop.eup %1389  ;;  %v253_v40 = vmax.f32 %v191_v37, 1e-24 }
 0x193   :  { %v266_v41 = vmul.f32 %v1390_v39, %v252_v33  ;;  %v260_v42 = vmul.f32 %v1388_v32, %v259_v38  ;;  %vm272_vm4 = vweird.f32 %v1390_v39  ;;  %v46_v33 = vld [vmem:[%s2118_s6 + $0x18] sm:$0xff] }
 0x194   :  { %1391 = vrsqrt.f32 %v253_v40  ;;  %vm273_vm6 = vmor %vm271_vm5, %vm272_vm4  ;;  %vm281_vm8 = vweird.f32 %v253_v40 }
 0x195   :  { %v267_v43 = vmul.f32 %v1390_v39, %v266_v41  ;;  %v264_v44 = vsel %vm263_vm3, %v1388_v32, %v260_v42  ;;  %v47_v32 = vld [vmem:[%s2118_s6 + $0x20] sm:$0xff] }
 0x196   :  { %299 = vrot.lane.b32.xlu2 %v264_v44, %s1484_s27  ;;  %666 = vmatpush.msrb.mxu1 %v47_v32 }
 0x197   :  { %v268_v45 = vmul.f32 0.5, %v267_v43 }
 0x198   :  { %667 = vmatpush.msrb.mxu1 %v46_v33 }
 0x199   :  { %v269_v46 = vsub.f32 1.5, %v268_v45  ;;  %v194_v47 = vpop.f32.mrf.mxu3 }
 0x19a   :  { %v1392_v48 = vpop.eup %1391  ;;  %v254_v49 = vmax.f32 %v194_v47, 1e-24  ;;  %668 = vmatpush.msrb.mxu1 %v45_v34 }
 0x19b   :  { %v276_v50 = vmul.f32 %v1392_v48, %v253_v40  ;;  %v270_v51 = vmul.f32 %v1390_v39, %v269_v46  ;;  %vm282_vm7 = vweird.f32 %v1392_v48 }
 0x19c   :  { %1393 = vrsqrt.f32 %v254_v49  ;;  %vm283_vm9 = vmor %vm281_vm8, %vm282_vm7  ;;  %vm291_vm10 = vweird.f32 %v254_v49  ;;  %669 = vmatpush.msrb.mxu1 %v44_v35 }
 0x19d   :  { %v277_v52 = vmul.f32 %v1392_v48, %v276_v50  ;;  %v274_v53 = vsel %vm273_vm6, %v1390_v39, %v270_v51  ;;  %v140_v39 = vpop.f32.mrf.mxu1 }
 0x19e   :  { %301 = vrot.lane.b32.xlu2 %v274_v53, %s1484_s27  ;;  %670 = vmatpush.msrb.mxu1 %v43_v36  ;;  %v197_v41 = vmax.f32 %v140_v39, 1e-24 }
 0x19f   :  { %v278_v54 = vmul.f32 0.5, %v277_v52 }
 0x1a0   :  { %1395 = vrsqrt.f32 %v197_v41  ;;  %vm207_vm1 = vweird.f32 %v197_v41 }
 0x1a1   :  { %v279_v55 = vsub.f32 1.5, %v278_v54 }
 0x1a2   :  { %v1394_v56 = vpop.eup %1393 }
 0x1a3   :  { %v286_v57 = vmul.f32 %v1394_v56, %v254_v49  ;;  %v280_v58 = vmul.f32 %v1392_v48, %v279_v55  ;;  %vm292_vm11 = vweird.f32 %v1394_v56 }
 0x1a4   :  { %vm293_vm12 = vmor %vm291_vm10, %vm292_vm11 }
 0x1a5   :  { %v287_v59 = vmul.f32 %v1394_v56, %v286_v57  ;;  %v284_v60 = vsel %vm283_vm9, %v1392_v48, %v280_v58  ;;  %v143_v43 = vpop.f32.mrf.mxu1 }
 0x1a6   :  { %303 = vrot.lane.b32.xlu0 %v284_v60, %s1484_s27  ;;  %v1709_v45 = vmax.f32 %v143_v43, 1e-24  ;;  %v1396_v46 = vpop.eup %1395 }
 0x1a7   :  { %v288_v61 = vmul.f32 0.5, %v287_v59  ;;  %v202_v49 = vmul.f32 %v1396_v46, %v197_v41  ;;  %vm208_vm13 = vweird.f32 %v1396_v46 }
 0x1a8   :  { %1397 = vrsqrt.f32 %v1709_v45  ;;  %vm209_vm2 = vmor %vm207_vm1, %vm208_vm13  ;;  %vm217_vm4 = vweird.f32 %v1709_v45 }
 0x1a9   :  { %v289_v62 = vsub.f32 1.5, %v288_v61  ;;  %v203_v51 = vmul.f32 %v1396_v46, %v202_v49 }
 0x1ab   :  { %v290_v63 = vmul.f32 %v1394_v56, %v289_v62  ;;  %v204_v54 = vmul.f32 0.5, %v203_v51 }
 0x1ad   :  { %v294_v0 = vsel %vm293_vm12, %v1394_v56, %v290_v63  ;;  %v146_v48 = vpop.f32.mrf.mxu1  ;;  %v205_v59 = vsub.f32 1.5, %v204_v54 }
 0x1ae   :  { %305 = vrot.lane.b32.xlu1 %v294_v0, %s1484_s27  ;;  %v1712_v52 = vmax.f32 %v146_v48, 1e-24  ;;  %v1714_v53 = vpop.eup %1397 }
 0x1af   :  { %v212_v55 = vmul.f32 %v1714_v53, %v1709_v45  ;;  %v206_v63 = vmul.f32 %v1396_v46, %v205_v59  ;;  %vm218_vm3 = vweird.f32 %v1714_v53 }
 0x1b0   :  { %1399 = vrsqrt.f32 %v1712_v52  ;;  %vm219_vm5 = vmor %vm217_vm4, %vm218_vm3  ;;  %vm227_vm7 = vweird.f32 %v1712_v52 }
 0x1b1   :  { %v213_v60 = vmul.f32 %v1714_v53, %v212_v55 }
 0x1b3   :  { %v214_v0 = vmul.f32 0.5, %v213_v60 }
 0x1b5   :  { %v149_v58 = vpop.f32.mrf.mxu1 }
 0x1b6   :  { %v1720_v61 = vmax.f32 %v149_v58, 1e-24  ;;  %v1722_v62 = vpop.eup %1399 }
 0x1b7   :  { %vm228_vm6 = vweird.f32 %v1722_v62 }
 0x1b8   :  { %1401 = vrsqrt.f32 %v1720_v61  ;;  %vm229_vm8 = vmor %vm227_vm7, %vm228_vm6  ;;  %vm237_vm9 = vweird.f32 %v1720_v61 }
 0x1f0   :  { %v300_v1 = vpop.permute.xlu2 %299 }
 0x1f1   :  { %v311_v2 = vmul.f32 %v300_v1, %v1573_v14 }
 0x1f3   :  { %319 = vrot.lane.b32.xlu2 %v311_v2, %s1483_s26  ;;  %v222_v2 = vmul.f32 %v1722_v62, %v1712_v52 }
 0x1f8   :  { %v302_v3 = vpop.permute.xlu2 %301 }
 0x1f9   :  { %v312_v4 = vmul.f32 %v302_v3, %v1579_v17 }
 0x1fb   :  { %321 = vrot.lane.b32.xlu0 %v312_v4, %s1483_s26 }
 0x218   :  { %v304_v5 = vpop.permute.xlu0 %303 }
 0x219   :  { %v313_v6 = vmul.f32 %v304_v5, %v1585_v20  ;;  %v34_v5 = vld [vmem:[%s2117_s5 + $0x18] sm:$0xff] }
 0x21b   :  { %323 = vrot.lane.b32.xlu1 %v313_v6, %s1483_s26 }
 0x220   :  { %v306_v7 = vpop.permute.xlu1 %305 }
 0x221   :  { %v314_v8 = vmul.f32 %v306_v7, %v1591_v23 }
 0x223   :  { %325 = vrot.lane.b32.xlu2 %v314_v8, %s1483_s26 }
 0x24d   :  { %v320_v9 = vpop.permute.xlu2 %319 }
 0x24e   :  { %331 = vxpose.xlu0.b32.start [1/4] (short) (narrow) %v320_v9, 32 }
 0x26d   :  { %v322_v10 = vpop.permute.xlu0 %321 }
 0x26e   :  { %332 = vxpose.xlu0.b32.cont [2/4] (short) (narrow) %v322_v10, 32 }
 0x27d   :  { %v326_v12 = vpop.permute.xlu2 %325 }
 0x28d   :  { %v324_v11 = vpop.permute.xlu1 %323 }
 0x28e   :  { %333 = vxpose.xlu0.b32.cont [3/4] (short) (narrow) %v324_v11, 32 }
 0x296   :  { %334 = vxpose.xlu0.b32.end [4/4] (short) (narrow) %v326_v12, 32  ;;  %v33_v12 = vld [vmem:[%s2117_s5 + $0x10] sm:$0xff] }
 0x304   :  { %520 = vrot.lane.b32.xlu0 %v54_v13, %s1485_s30 }
 0x322   :  { %v1617_v15 = vpop.trf.xlu0 }
 0x323   :  { %367 = vrot.lane.b32.xlu1 %v1617_v15, %s1484_s27 }
 0x32a   :  { %v1621_v16 = vpop.trf.xlu0 }
 0x32b   :  { %369 = vrot.lane.b32.xlu2 %v1621_v16, %s1484_s27 }
 0x332   :  { %v1625_v18 = vpop.trf.xlu0 }
 0x333   :  { %381 = vrot.lane.b32.xlu2 %v1621_v16, %s1485_s30  ;;  %371 = vrot.lane.b32.xlu1 %v1625_v18, %s1484_s27 }
 0x33a   :  { %v1641_v22 = vpop.trf.xlu0 }
 0x33b   :  { %393 = vrot.lane.b32.xlu2 %v1621_v16, %s1483_s26  ;;  %383 = vrot.lane.b32.xlu1 %v1625_v18, %s1485_s30 }
 0x343   :  { %395 = vrot.lane.b32.xlu1 %v1625_v18, %s1483_s26  ;;  %385 = vrot.lane.b32.xlu2 %v1641_v22, %s1485_s30 }
 0x34b   :  { %397 = vrot.lane.b32.xlu2 %v1641_v22, %s1483_s26  ;;  %373 = vrot.lane.b32.xlu1 %v1641_v22, %s1484_s27 }
 0x353   :  { %391 = vrot.lane.b32.xlu2 %v1617_v15, %s1483_s26  ;;  %379 = vrot.lane.b32.xlu1 %v1617_v15, %s1485_s30 }
 0x35b   :  { %526 = vrot.lane.b32.xlu2 %v57_v21, %s1485_s30  ;;  %528 = vrot.lane.b32.xlu1 %v58_v19, %s1485_s30  ;;  %v210_v19 = vsel %vm209_vm2, %v1396_v46, %v206_v63  ;;  %v215_v21 = vsub.f32 1.5, %v214_v0 }
 0x363   :  { %522 = vrot.lane.b32.xlu2 %v55_v25, %s1485_s30  ;;  %524 = vrot.lane.b32.xlu1 %v56_v24, %s1485_s30  ;;  %v1402_v25 = vpop.eup %1401 }
 0x364   :  { %vm238_vm10 = vweird.f32 %v1402_v25 }
 0x365   :  { %vm239_vm11 = vmor %vm237_vm9, %vm238_vm10 }
 0x36b   :  { %516 = vrot.lane.b32.xlu2 %v52_v27, %s1485_s30  ;;  %518 = vrot.lane.b32.xlu1 %v53_v26, %s1485_s30  ;;  %v241_v27 = vmul.f32 %v210_v19, %v1573_v14 }
 0x373   :  { %512 = vrot.lane.b32.xlu2 %v50_v29, %s1485_s30  ;;  %514 = vrot.lane.b32.xlu1 %v51_v28, %s1485_s30 }
 0x376   :  { %v521_v63 = vpop.permute.xlu0 %520 }
 0x37b   :  { %508 = vrot.lane.b32.xlu2 %v48_v31, %s1485_s30  ;;  %510 = vrot.lane.b32.xlu1 %v49_v30, %s1485_s30  ;;  %v31_v31 = vld [vmem:[%s2117_s5] sm:$0xff] }
 0x383   :  { %504 = vrot.lane.b32.xlu2 %v46_v33, %s1485_s30  ;;  %506 = vrot.lane.b32.xlu1 %v47_v32, %s1485_s30  ;;  %v1379_v32 = vld [vmem:[%s2117_s5 + $0x61] ss:$0 sm:$0xff]  ;;  %v216_v33 = vmul.f32 %v1714_v53, %v215_v21 }
 0x384   :  { %v247_v39 = vmul.f32 %v1379_v32, %v241_v27 }
 0x385   :  { %v370_v37 = vpop.permute.xlu2 %369 }
 0x386   :  { %v404_v9 = vsel %vm65_vm0, %v1621_v16, %v370_v37  ;;  %v32_v16 = vld [vmem:[%s2117_s5 + $0x8] sm:$0xff] }
 0x38b   :  { %500 = vrot.lane.b32.xlu2 %v44_v35, %s1485_s30  ;;  %502 = vrot.lane.b32.xlu1 %v45_v34, %s1485_s30  ;;  %v232_v35 = vmul.f32 %v1402_v25, %v1720_v61 }
 0x38d   :  { %v382_v38 = vpop.permute.xlu2 %381  ;;  %v233_v41 = vmul.f32 %v1402_v25, %v232_v35 }
 0x38e   :  { %v409_v13 = vsel %vm407_vm14, %v404_v9, %v382_v38 }
 0x38f   :  { %v234_v46 = vmul.f32 0.5, %v233_v41 }
 0x391   :  { %v235_v51 = vsub.f32 1.5, %v234_v46 }
 0x393   :  { %498 = vrot.lane.b32.xlu1 %v43_v36, %s1485_s30 }
 0x395   :  { %v368_v40 = vpop.permute.xlu1 %367  ;;  %v394_v42 = vpop.permute.xlu2 %393 }
 0x396   :  { %v414_v24 = vsel %vm412_vm15, %v409_v13, %v394_v42  ;;  %v403_v28 = vsel %vm65_vm0, %v1617_v15, %v368_v40  ;;  %v220_v42 = vsel %vm219_vm5, %v1714_v53, %v216_v33 }
 0x397   :  { %v418_v30 = vmul.f32 %v414_v24, %v32_v16 }
 0x39d   :  { %v386_v47 = vpop.permute.xlu2 %385 }
 0x3a5   :  { %v372_v44 = vpop.permute.xlu1 %371  ;;  %v398_v56 = vpop.permute.xlu2 %397 }
 0x3a6   :  { %v405_v3 = vsel %vm65_vm0, %v1625_v18, %v372_v44  ;;  %v242_v44 = vmul.f32 %v220_v42, %v1579_v17  ;;  %v36_v42 = vld [vmem:[%s2117_s5 + $0x28] sm:$0xff] }
 0x3ad   :  { %v384_v50 = vpop.permute.xlu1 %383  ;;  %v392_v7 = vpop.permute.xlu2 %391 }
 0x3ae   :  { %v410_v6 = vsel %vm407_vm14, %v405_v3, %v384_v50  ;;  %v248_v50 = vmul.f32 %v1379_v32, %v242_v44 }
 0x3b5   :  { %v396_v57 = vpop.permute.xlu1 %395  ;;  %v527_v38 = vpop.permute.xlu2 %526 }
 0x3b6   :  { %v415_v10 = vsel %vm412_vm15, %v410_v6, %v396_v57  ;;  %v236_v57 = vmul.f32 %v1402_v25, %v235_v51 }
 0x3b7   :  { %v419_v26 = vmul.f32 %v415_v10, %v33_v12 }
 0x3bd   :  { %v374_v1 = vpop.permute.xlu1 %373  ;;  %v523_v54 = vpop.permute.xlu2 %522 }
 0x3be   :  { %v406_v4 = vsel %vm65_vm0, %v1641_v22, %v374_v1  ;;  %v223_v22 = vmul.f32 %v1722_v62, %v222_v2  ;;  %v558_v52 = vmul.f32 %v523_v54, %v1573_v14  ;;  %v557_v2 = vmul.f32 %v521_v63, %v1591_v23 }
 0x3bf   :  { %v411_v8 = vsel %vm407_vm14, %v406_v4, %v386_v47  ;;  %v560_v47 = vmul.f32 %v527_v38, %v1585_v20 }
 0x3c0   :  { %v416_v11 = vsel %vm412_vm15, %v411_v8, %v398_v56  ;;  %v224_v34 = vmul.f32 0.5, %v223_v22 }
 0x3c1   :  { %v420_v18 = vmul.f32 %v416_v11, %v34_v5 }
 0x3c2   :  { %v225_v40 = vsub.f32 1.5, %v224_v34 }
 0x3c3   :  { %445 = vmatpush.msrb.mxu3 %v420_v18 }
 0x3c4   :  { %v226_v45 = vmul.f32 %v1722_v62, %v225_v40 }
 0x3c5   :  { %446 = vmatpush.msrb.mxu3 %v419_v26  ;;  %v380_v29 = vpop.permute.xlu1 %379  ;;  %v517_v0 = vpop.permute.xlu2 %516 }
 0x3c6   :  { %v408_v36 = vsel %vm407_vm14, %v403_v28, %v380_v29  ;;  %v230_v53 = vsel %vm229_vm8, %v1722_v62, %v226_v45  ;;  %v240_v62 = vsel %vm239_vm11, %v1402_v25, %v236_v57  ;;  %v38_v57 = vld [vmem:[%s2117_s5 + $0x38] sm:$0xff] }
 0x3c7   :  { %447 = vmatpush.msrb.mxu3 %v418_v30  ;;  %v413_v15 = vsel %vm412_vm15, %v408_v36, %v392_v7  ;;  %v243_v56 = vmul.f32 %v230_v53, %v1585_v20  ;;  %v244_v1 = vmul.f32 %v240_v62, %v1591_v23  ;;  %v555_v7 = vmul.f32 %v517_v0, %v1579_v17 }
 0x3c8   :  { %v417_v37 = vmul.f32 %v413_v15, %v31_v31 }
 0x3c9   :  { %v249_v60 = vmul.f32 %v1379_v32, %v243_v56  ;;  %v250_v5 = vmul.f32 %v1379_v32, %v244_v1 }
 0x3ca   :  { %448 = vmatpush.msrb.mxu3 %v417_v37  ;;  %v35_v37 = vld [vmem:[%s2117_s5 + $0x20] sm:$0xff] }
 0x3cb   :  { %1282 = vmatmul.msk.f32.vlgmr.msrb.gmra.mxu3 %vm65_vm0, %v247_v39 }
 0x3cd   :  { %v529_v43 = vpop.permute.xlu1 %528  ;;  %v513_v9 = vpop.permute.xlu2 %512 }
 0x3ce   :  { %v561_v48 = vmul.f32 %v529_v43, %v1591_v23  ;;  %v553_v12 = vmul.f32 %v513_v9, %v1591_v23 }
 0x3d0   :  { %v1338_v49 = vpack.i.bf16 %v560_v47, %v561_v48 }
 0x3d2   :  { %1339 = vrot.lane.b32.xlu2 %v1338_v49, %s1485_s30 }
 0x3d3   :  { %1283 = vmatmul.msk.f32.gmra.mxu3 %vm65_vm0, %v248_v50  ;;  %v37_v50 = vld [vmem:[%s2117_s5 + $0x30] sm:$0xff] }
 0x3d5   :  { %v525_v55 = vpop.permute.xlu1 %524  ;;  %v509_v19 = vpop.permute.xlu2 %508 }
 0x3d6   :  { %v559_v58 = vmul.f32 %v525_v55, %v1579_v17  ;;  %v551_v22 = vmul.f32 %v509_v19, %v1579_v17 }
 0x3d8   :  { %v1343_v59 = vpack.i.bf16 %v558_v52, %v559_v58 }
 0x3da   :  { %1344 = vrot.lane.b32.xlu1 %v1343_v59, %s1485_s30 }
 0x3db   :  { %1284 = vmatmul.msk.f32.gmra.mxu3 %vm65_vm0, %v249_v60 }
 0x3dd   :  { %v519_v61 = vpop.permute.xlu1 %518  ;;  %v505_v25 = vpop.permute.xlu2 %504 }
 0x3de   :  { %v556_v3 = vmul.f32 %v519_v61, %v1585_v20  ;;  %v549_v27 = vmul.f32 %v505_v25, %v1591_v23  ;;  %v693_v25 = vld [vmem:[%s2114_s2 + $0x8] sm:$0xff] }
 0x3e0   :  { %v1348_v4 = vpack.i.bf16 %v556_v3, %v557_v2 }
 0x3e2   :  { %1349 = vrot.lane.b32.xlu2 %v1348_v4, %s1485_s30 }
 0x3e3   :  { %1285 = vmatmul.msk.f32.gmra.mxu3 %vm65_vm0, %v250_v5 }
 0x3e5   :  { %v515_v6 = vpop.permute.xlu1 %514  ;;  %v501_v30 = vpop.permute.xlu2 %500 }
 0x3e6   :  { %v554_v8 = vmul.f32 %v515_v6, %v1573_v14  ;;  %v547_v55 = vmul.f32 %v501_v30, %v1579_v17 }
 0x3e8   :  { %v1353_v10 = vpack.i.bf16 %v554_v8, %v555_v7 }
 0x3ea   :  { %1354 = vrot.lane.b32.xlu2 %v1353_v10, %s1485_s30 }
 0x3ed   :  { %v511_v11 = vpop.permute.xlu1 %510 }
 0x3ee   :  { %v552_v13 = vmul.f32 %v511_v11, %v1585_v20 }
 0x3f0   :  { %v1358_v18 = vpack.i.bf16 %v552_v13, %v553_v12 }
 0x3f2   :  { %1359 = vrot.lane.b32.xlu2 %v1358_v18, %s1485_s30 }
 0x3f5   :  { %v507_v21 = vpop.permute.xlu1 %506 }
 0x3f6   :  { %v550_v24 = vmul.f32 %v507_v21, %v1573_v14 }
 0x3f8   :  { %v1363_v16 = vpack.i.bf16 %v550_v24, %v551_v22  ;;  %v695_v24 = vld [vmem:[%s2114_s2 + $0x18] sm:$0xff] }
 0x3f9   :  { %722 = vmatpush.msrb.mxu2 %v695_v24 }
 0x3fd   :  { %v503_v26 = vpop.permute.xlu1 %502 }
 0x3fe   :  { %v548_v28 = vmul.f32 %v503_v26, %v1585_v20  ;;  %v692_v26 = vld [vmem:[%s2114_s2] sm:$0xff] }
 0x400   :  { %v1368_v29 = vpack.i.bf16 %v548_v28, %v549_v27 }
 0x402   :  { %1369 = vrot.lane.b32.xlu0 %v1368_v29, %s1485_s30 }
 0x405   :  { %v499_v35 = vpop.permute.xlu1 %498 }
 0x406   :  { %v546_v54 = vmul.f32 %v499_v35, %v1573_v14 }
 0x408   :  { %v1373_v56 = vpack.i.bf16 %v546_v54, %v547_v55  ;;  %v1486_v54 = vmov 32.0  }
 0x42c   :  { %v1340_v31 = vpop.permute.xlu2 %1339 }
 0x42d   :  { %v1341_v32 = vunpack.i.l.bf16 %v1340_v31  ;;  %v1342_v33 = vunpack.i.h.bf16 %v1340_v31 }
 0x42f   :  { %626 = vmatpush.msrb.mxu0 %v1341_v32 }
 0x431   :  { %627 = vmatpush.msrb.mxu0 %v1342_v33 }
 0x43c   :  { %v1350_v34 = vpop.permute.xlu2 %1349 }
 0x43d   :  { %v1351_v40 = vunpack.i.l.bf16 %v1350_v34  ;;  %v1352_v41 = vunpack.i.h.bf16 %v1350_v34 }
 0x444   :  { %v1355_v36 = vpop.permute.xlu2 %1354 }
 0x445   :  { %v1356_v43 = vunpack.i.l.bf16 %v1355_v36  ;;  %v1357_v47 = vunpack.i.h.bf16 %v1355_v36 }
 0x44c   :  { %v1345_v15 = vpop.permute.xlu1 %1344  ;;  %v1360_v44 = vpop.permute.xlu2 %1359 }
 0x44d   :  { %v1346_v23 = vunpack.i.l.bf16 %v1345_v15  ;;  %v1347_v39 = vunpack.i.h.bf16 %v1345_v15  ;;  %v1361_v48 = vunpack.i.l.bf16 %v1360_v44  ;;  %v1362_v49 = vunpack.i.h.bf16 %v1360_v44 }
 0x44e   :  { %v450_v38 = vpop.f32.mrf.mxu3 }
 0x44f   :  { %v451_v20 = vadd.f32 %v450_v38, %v35_v37  ;;  %628 = vmatpush.msrb.mxu0 %v1346_v23 }
 0x451   :  { %629 = vmatpush.msrb.mxu0 %v1347_v39  ;;  %462 = vmax.xlane.f32.xlu1 %v451_v20 }
 0x453   :  { %630 = vmatpush.msrb.mxu0 %v1351_v40  ;;  %v1380_v40 = vld [vmem:[%s2117_s5 + $0x62] ss:$0 sm:$0xff] }
 0x455   :  { %631 = vmatpush.msrb.mxu0 %v1352_v41 }
 0x456   :  { %v453_v45 = vpop.f32.mrf.mxu3 }
 0x457   :  { %v454_v46 = vadd.f32 %v453_v45, %v36_v42  ;;  %632 = vmatpush.msrb.mxu0 %v1356_v43 }
 0x459   :  { %633 = vmatpush.msrb.mxu0 %v1357_v47  ;;  %464 = vmax.xlane.f32.xlu2 %v454_v46 }
 0x45b   :  { %634 = vmatpush.msrb.mxu0 %v1361_v48 }
 0x45d   :  { %635 = vmatpush.msrb.mxu0 %v1362_v49 }
 0x45e   :  { %v456_v51 = vpop.f32.mrf.mxu3 }
 0x45f   :  { %v457_v53 = vadd.f32 %v456_v51, %v37_v50 }
 0x461   :  { %466 = vmax.xlane.f32.xlu0 %v457_v53 }
 0x466   :  { %v459_v52 = vpop.f32.mrf.mxu3 }
 0x467   :  { %v460_v58 = vadd.f32 %v459_v52, %v38_v57 }
 0x46a   :  { %1364 = vrot.lane.b32.xlu1 %v1363_v16, %s1485_s30  ;;  %v694_v16 = vld [vmem:[%s2114_s2 + $0x10] sm:$0xff] }
 0x46b   :  { %723 = vmatpush.msrb.mxu2 %v694_v16 }
 0x46d   :  { %724 = vmatpush.msrb.mxu2 %v693_v25 }
 0x46f   :  { %725 = vmatpush.msrb.mxu2 %v692_v26 }
 0x471   :  { %1374 = vrot.lane.b32.xlu2 %v1373_v56, %s1485_s30 }
 0x474   :  { %v1370_v63 = vpop.permute.xlu0 %1369 }
 0x475   :  { %v1371_v9 = vunpack.i.l.bf16 %v1370_v63  ;;  %v1372_v11 = vunpack.i.h.bf16 %v1370_v63 }
 0x494   :  { %468 = vmax.xlane.f32.xlu1 %v460_v58 }
 0x4c4   :  { %v463_v59 = vpop.xlane.xlu1 %462 }
 0x4c5   :  { %v470_v60 = vsub.f32 %v451_v20, %v463_v59 }
 0x4c7   :  { %v474_v62 = vmul.f32 1.442695, %v470_v60 }
 0x4c9   :  { %1403 = vpow2.f32 %v474_v62 }
 0x4cc   :  { %v465_v0 = vpop.xlane.xlu2 %464 }
 0x4cd   :  { %v471_v61 = vsub.f32 %v454_v46, %v465_v0 }
 0x4cf   :  { %v1404_v14 = vpop.eup %1403  ;;  %v476_v1 = vmul.f32 1.442695, %v471_v61 }
 0x4d0   :  { %671 = vmatmul.f32.vlgmr.msrb.gmra.mxu1 %v1404_v14 }
 0x4d1   :  { %1405 = vpow2.f32 %v476_v1 }
 0x4d4   :  { %v467_v17 = vpop.xlane.xlu0 %466  ;;  %v1375_v10 = vpop.permute.xlu2 %1374 }
 0x4d5   :  { %v472_v2 = vsub.f32 %v457_v53, %v467_v17  ;;  %v1376_v12 = vunpack.i.l.bf16 %v1375_v10  ;;  %v1377_v13 = vunpack.i.h.bf16 %v1375_v10 }
 0x4d7   :  { %v1406_v3 = vpop.eup %1405  ;;  %v478_v4 = vmul.f32 1.442695, %v472_v2 }
 0x4d8   :  { %674 = vmatmul.f32.gmra.mxu1 %v1406_v3 }
 0x4d9   :  { %1407 = vpow2.f32 %v478_v4 }
 0x4dc   :  { %v1365_v5 = vpop.permute.xlu1 %1364 }
 0x4dd   :  { %v1366_v6 = vunpack.i.l.bf16 %v1365_v5  ;;  %v1367_v8 = vunpack.i.h.bf16 %v1365_v5 }
 0x4df   :  { %v1408_v7 = vpop.eup %1407  ;;  %636 = vmatpush.msrb.mxu0 %v1366_v6 }
 0x4e0   :  { %677 = vmatmul.f32.gmra.mxu1 %v1408_v7 }
 0x4e1   :  { %637 = vmatpush.msrb.mxu0 %v1367_v8 }
 0x4e3   :  { %638 = vmatpush.msrb.mxu0 %v1371_v9 }
 0x4e5   :  { %639 = vmatpush.msrb.mxu0 %v1372_v11 }
 0x4e7   :  { %640 = vmatpush.msrb.mxu0 %v1376_v12 }
 0x4e9   :  { %641 = vmatpush.msrb.mxu0 %v1377_v13 }
 0x4ea   :  { %642 = vmatmul.f32.vlgmr.msrb.gmra.mxu0 %v1404_v14 }
 0x4f2   :  { %645 = vmatmul.f32.gmra.mxu0 %v1406_v3 }
 0x4fa   :  { %648 = vmatmul.f32.gmra.mxu0 %v1408_v7 }
 0x507   :  { %v469_v18 = vpop.xlane.xlu1 %468 }
 0x508   :  { %v473_v19 = vsub.f32 %v460_v58, %v469_v18  ;;  %v853_v18 = vld [vmem:[%s2115_s3 + $0x18] sm:$0xff] }
 0x509   :  { %880 = vmatpush.msra.mxu3 %v853_v18 }
 0x50a   :  { %v480_v21 = vmul.f32 1.442695, %v473_v19  ;;  %v852_v19 = vld [vmem:[%s2115_s3 + $0x10] sm:$0xff] }
 0x50b   :  { %881 = vmatpush.msra.mxu3 %v852_v19 }
 0x50c   :  { %1409 = vpow2.f32 %v480_v21  ;;  %v851_v21 = vld [vmem:[%s2115_s3 + $0x8] sm:$0xff] }
 0x50d   :  { %882 = vmatpush.msra.mxu3 %v851_v21  ;;  %v1456_v21 = vld [vmem:[%s2112_s0 + $0x18] sm:$0xff] }
 0x512   :  { %v1410_v22 = vpop.eup %1409 }
 0x513   :  { %651 = vmatmul.f32.gmra.mxu0 %v1410_v22  ;;  %680 = vmatmul.f32.gmra.mxu1 %v1410_v22  ;;  %v850_v22 = vld [vmem:[%s2115_s3] sm:$0xff]  ;;  %s1489_s3 = smov 8  }
 0x514   :  { %883 = vmatpush.msra.mxu3 %v850_v22 }
 0x54d   :  { %v672_v27 = vpop.f32.mrf.mxu1 }
 0x54e   :  { %1411 = vrcp.f32 %v672_v27 }
 0x554   :  { %v1412_v29 = vpop.eup %1411 }
 0x555   :  { %v675_v28 = vpop.f32.mrf.mxu1 }
 0x556   :  { %1413 = vrcp.f32 %v675_v28 }
 0x55c   :  { %v1414_v33 = vpop.eup %1413 }
 0x55d   :  { %v678_v32 = vpop.f32.mrf.mxu1 }
 0x55e   :  { %1415 = vrcp.f32 %v678_v32 }
 0x564   :  { %v1416_v36 = vpop.eup %1415 }
 0x567   :  { %v643_v30 = vpop.f32.mrf.mxu0 }
 0x568   :  { %v688_v31 = vmul.f32 %v1412_v29, %v643_v30 }
 0x56a   :  { %1286 = vmatmul.msk.f32.vlgmr.msrb.gmra.mxu2 %vm65_vm0, %v688_v31 }
 0x56f   :  { %v646_v34 = vpop.f32.mrf.mxu0 }
 0x570   :  { %v689_v35 = vmul.f32 %v1414_v33, %v646_v34 }
 0x572   :  { %1287 = vmatmul.msk.f32.gmra.mxu2 %vm65_vm0, %v689_v35 }
 0x577   :  { %v649_v15 = vpop.f32.mrf.mxu0 }
 0x578   :  { %v690_v37 = vmul.f32 %v1416_v36, %v649_v15 }
 0x57a   :  { %1288 = vmatmul.msk.f32.gmra.mxu2 %vm65_vm0, %v690_v37 }
 0x590   :  { %v681_v23 = vpop.f32.mrf.mxu1  ;;  %v652_v20 = vpop.f32.mrf.mxu0 }
 0x591   :  { %1417 = vrcp.f32 %v681_v23 }
 0x592   :  { %1419 = vrcp.f32 %v1486_v54 }
 0x597   :  { %v1418_v38 = vpop.eup %1417 }
 0x598   :  { %v691_v39 = vmul.f32 %v1418_v38, %v652_v20  ;;  %v1420_v55 = vpop.eup %1419  ;;  %v1381_v38 = vld [vmem:[%s2117_s5 + $0x63] ss:$0 sm:$0xff] }
 0x599   :  { %v754_v56 = vmul.f32 32.0, %v1420_v55  ;;  %vm758_vm12 = vweird.f32 %v1420_v55 }
 0x59a   :  { %1289 = vmatmul.msk.f32.gmra.mxu2 %vm65_vm0, %v691_v39 }
 0x59b   :  { %v755_v57 = vsub.f32 1.0, %v754_v56 }
 0x59d   :  { %v756_v52 = vmul.f32 %v1420_v55, %v755_v57 }
 0x59f   :  { %v757_v58 = vadd.f32 %v1420_v55, %v756_v52 }
 0x5a1   :  { %v1839_v59 = vsel %vm758_vm12, %v1420_v55, %v757_v58 }
 0x5ed   :  { %v727_v41 = vpop.f32.mrf.mxu2 }
 0x5ee   :  { %v728_v42 = vadd.f32 %v1380_v40, %v727_v41 }
 0x5f0   :  { %v741_v43 = vsel %vm65_vm0, %v728_v42, 0.0 }
 0x5f1   :  { %742 = vadd.xlane.f32.xlu2 %v741_v43 }
 0x5f5   :  { %v730_v44 = vpop.f32.mrf.mxu2 }
 0x5f6   :  { %v731_v45 = vadd.f32 %v1380_v40, %v730_v44 }
 0x5f8   :  { %v744_v46 = vsel %vm65_vm0, %v731_v45, 0.0 }
 0x5f9   :  { %745 = vadd.xlane.f32.xlu0 %v744_v46 }
 0x5fd   :  { %v733_v47 = vpop.f32.mrf.mxu2 }
 0x5fe   :  { %v734_v48 = vadd.f32 %v1380_v40, %v733_v47 }
 0x600   :  { %v747_v49 = vsel %vm65_vm0, %v734_v48, 0.0 }
 0x601   :  { %748 = vadd.xlane.f32.xlu0 %v747_v49  ;;  %v1453_v49 = vld [vmem:[%s2112_s0] sm:$0xff] }
 0x61d   :  { %v736_v50 = vpop.f32.mrf.mxu2 }
 0x61e   :  { %v737_v51 = vadd.f32 %v1380_v40, %v736_v50  ;;  %v1382_v40 = vld [vmem:[%s2117_s5 + $0x64] ss:$0 sm:$0xff] }
 0x620   :  { %v750_v53 = vsel %vm65_vm0, %v737_v51, 0.0 }
 0x621   :  { %751 = vadd.xlane.f32.xlu1 %v750_v53 }
 0x664   :  { %v743_v60 = vpop.xlane.xlu2 %742 }
 0x665   :  { %v760_v62 = vmul.f32 %v1839_v59, %v743_v60  ;;  %v1454_v60 = vld [vmem:[%s2112_s0 + $0x8] sm:$0xff] }
 0x667   :  { %v764_v63 = vsub.f32 %v728_v42, %v760_v62 }
 0x669   :  { %v768_v0 = vmul.f32 %v764_v63, %v764_v63 }
 0x66b   :  { %v772_v61 = vsel %vm65_vm0, %v768_v0, 0.0 }
 0x66c   :  { %v746_v14 = vpop.xlane.xlu0 %745  ;;  %773 = vadd.xlane.f32.xlu0 %v772_v61 }
 0x66d   :  { %v761_v1 = vmul.f32 %v1839_v59, %v746_v14 }
 0x66f   :  { %v1844_v17 = vsub.f32 %v731_v45, %v761_v1  ;;  %v1455_v1 = vld [vmem:[%s2112_s0 + $0x10] sm:$0xff] }
 0x671   :  { %v769_v2 = vmul.f32 %v1844_v17, %v1844_v17 }
 0x673   :  { %v775_v3 = vsel %vm65_vm0, %v769_v2, 0.0 }
 0x674   :  { %v749_v4 = vpop.xlane.xlu0 %748  ;;  %776 = vadd.xlane.f32.xlu1 %v775_v3 }
 0x675   :  { %v762_v5 = vmul.f32 %v1839_v59, %v749_v4 }
 0x677   :  { %v1850_v6 = vsub.f32 %v734_v48, %v762_v5 }
 0x679   :  { %v770_v7 = vmul.f32 %v1850_v6, %v1850_v6 }
 0x67b   :  { %v778_v8 = vsel %vm65_vm0, %v770_v7, 0.0 }
 0x67c   :  { %779 = vadd.xlane.f32.xlu0 %v778_v8 }
 0x694   :  { %v752_v9 = vpop.xlane.xlu1 %751 }
 0x695   :  { %v763_v10 = vmul.f32 %v1839_v59, %v752_v9 }
 0x697   :  { %v1856_v11 = vsub.f32 %v737_v51, %v763_v10 }
 0x699   :  { %v771_v12 = vmul.f32 %v1856_v11, %v1856_v11 }
 0x69b   :  { %v781_v13 = vsel %vm65_vm0, %v771_v12, 0.0 }
 0x69c   :  { %782 = vadd.xlane.f32.xlu2 %v781_v13 }
 0x6df   :  { %v774_v24 = vpop.xlane.xlu0 %773 }
 0x6e0   :  { %v784_v16 = vmul.f32 %v774_v24, %v1839_v59  ;;  %v1917_v24 = vld [vmem:[%s2117_s5 + $0x65] ss:$0 sm:$0xff] }
 0x6e2   :  { %v788_v25 = vadd.f32 1e-05, %v784_v16 }
 0x6e4   :  { %1421 = vrsqrt.f32 %v788_v25  ;;  %vm798_vm14 = vweird.f32 %v788_v25 }
 0x6e7   :  { %v777_v26 = vpop.xlane.xlu1 %776 }
 0x6e8   :  { %v785_v27 = vmul.f32 %v777_v26, %v1839_v59 }
 0x6ea   :  { %v1422_v28 = vpop.eup %1421  ;;  %v789_v29 = vadd.f32 1e-05, %v785_v27 }
 0x6eb   :  { %v793_v30 = vmul.f32 %v1422_v28, %v788_v25  ;;  %vm799_vm13 = vweird.f32 %v1422_v28 }
 0x6ec   :  { %1423 = vrsqrt.f32 %v789_v29  ;;  %vm800_vm15 = vmor %vm798_vm14, %vm799_vm13  ;;  %vm808_vm2 = vweird.f32 %v789_v29 }
 0x6ed   :  { %v794_v31 = vmul.f32 %v1422_v28, %v793_v30 }
 0x6ef   :  { %v795_v32 = vmul.f32 0.5, %v794_v31  ;;  %v780_v33 = vpop.xlane.xlu0 %779 }
 0x6f0   :  { %v786_v34 = vmul.f32 %v780_v33, %v1839_v59 }
 0x6f1   :  { %v796_v35 = vsub.f32 1.5, %v795_v32 }
 0x6f2   :  { %v1424_v36 = vpop.eup %1423  ;;  %v790_v15 = vadd.f32 1e-05, %v786_v34 }
 0x6f3   :  { %v797_v37 = vmul.f32 %v1422_v28, %v796_v35  ;;  %v803_v23 = vmul.f32 %v1424_v36, %v789_v29  ;;  %vm809_vm1 = vweird.f32 %v1424_v36 }
 0x6f4   :  { %1425 = vrsqrt.f32 %v790_v15  ;;  %vm810_vm3 = vmor %vm808_vm2, %vm809_vm1  ;;  %vm818_vm5 = vweird.f32 %v790_v15 }
 0x6f5   :  { %v801_v20 = vsel %vm800_vm15, %v1422_v28, %v797_v37  ;;  %v804_v39 = vmul.f32 %v1424_v36, %v803_v23 }
 0x6f6   :  { %v832_v41 = vmul.f32 %v801_v20, %v764_v63 }
 0x6f7   :  { %v805_v42 = vmul.f32 0.5, %v804_v39 }
 0x6f8   :  { %v837_v43 = vmul.f32 %v1381_v38, %v832_v41 }
 0x6f9   :  { %v806_v44 = vsub.f32 1.5, %v805_v42 }
 0x6fa   :  { %v1426_v45 = vpop.eup %1425  ;;  %v842_v46 = vadd.f32 %v1382_v40, %v837_v43 }
 0x6fb   :  { %v807_v47 = vmul.f32 %v1424_v36, %v806_v44  ;;  %v813_v48 = vmul.f32 %v1426_v45, %v790_v15  ;;  %vm819_vm4 = vweird.f32 %v1426_v45  ;;  %v1112_v44 = vld [vmem:[%s2116_s4 + $0x78] sm:$0xff] }
 0x6fc   :  { %v1885_v50 = vadd.f32 %v1453_v49, %v842_v46  ;;  %vm820_vm6 = vmor %vm818_vm5, %vm819_vm4  ;;  %1115 = vmatpush.msra.mxu0 %v1112_v44  ;;  %1298 = vmatpush.msra.mxu1 %v1112_v44  ;;  %v1111_v49 = vld [vmem:[%s2116_s4 + $0x70] sm:$0xff] }
 0x6fd   :  { %v811_v51 = vsel %vm810_vm3, %v1424_v36, %v807_v47  ;;  %v814_v53 = vmul.f32 %v1426_v45, %v813_v48  ;;  %1299 = vmatpush.msra.mxu2 %v1112_v44 }
 0x6fe   :  { %v833_v54 = vmul.f32 %v811_v51, %v1844_v17  ;;  %1290 = vmatmul.msk.f32.vlgmr.msra.gmra.mxu3 %vm65_vm0, %v1885_v50  ;;  %1116 = vmatpush.msra.mxu0 %v1111_v49 }
 0x6ff   :  { %v815_v55 = vmul.f32 0.5, %v814_v53  ;;  %1300 = vmatpush.msra.mxu1 %v1111_v49  ;;  %1301 = vmatpush.msra.mxu2 %v1111_v49 }
 0x700   :  { %v838_v56 = vmul.f32 %v1381_v38, %v833_v54 }
 0x701   :  { %v816_v57 = vsub.f32 1.5, %v815_v55  ;;  %v1110_v55 = vld [vmem:[%s2116_s4 + $0x68] sm:$0xff] }
 0x702   :  { %v843_v52 = vadd.f32 %v1382_v40, %v838_v56  ;;  %1117 = vmatpush.msra.mxu0 %v1110_v55  ;;  %1302 = vmatpush.msra.mxu1 %v1110_v55 }
 0x703   :  { %v817_v58 = vmul.f32 %v1426_v45, %v816_v57  ;;  %1303 = vmatpush.msra.mxu2 %v1110_v55  ;;  %v1100_v55 = vld [vmem:[%s2116_s4 + $0x18] sm:$0xff] }
 0x704   :  { %v1893_v62 = vadd.f32 %v1454_v60, %v843_v52 }
 0x705   :  { %v821_v63 = vsel %vm820_vm6, %v1426_v45, %v817_v58  ;;  %v1109_v58 = vld [vmem:[%s2116_s4 + $0x60] sm:$0xff] }
 0x706   :  { %v834_v0 = vmul.f32 %v821_v63, %v1850_v6  ;;  %1291 = vmatmul.msk.f32.gmra.mxu3 %vm65_vm0, %v1893_v62  ;;  %1118 = vmatpush.msra.mxu0 %v1109_v58 }
 0x707   :  { %1304 = vmatpush.msra.mxu1 %v1109_v58  ;;  %1305 = vmatpush.msra.mxu2 %v1109_v58 }
 0x708   :  { %v839_v61 = vmul.f32 %v1381_v38, %v834_v0 }
 0x70a   :  { %v844_v14 = vadd.f32 %v1382_v40, %v839_v61  ;;  %v1108_v61 = vld [vmem:[%s2116_s4 + $0x58] sm:$0xff] }
 0x70b   :  { %1119 = vmatpush.msra.mxu0 %v1108_v61  ;;  %1306 = vmatpush.msra.mxu1 %v1108_v61 }
 0x70c   :  { %v1901_v17 = vadd.f32 %v1455_v1, %v844_v14  ;;  %1307 = vmatpush.msra.mxu2 %v1108_v61 }
 0x70e   :  { %1292 = vmatmul.msk.f32.gmra.mxu3 %vm65_vm0, %v1901_v17 }
 0x70f   :  { %v783_v2 = vpop.xlane.xlu2 %782 }
 0x710   :  { %v787_v3 = vmul.f32 %v783_v2, %v1839_v59 }
 0x712   :  { %v791_v4 = vadd.f32 1e-05, %v787_v3 }
 0x714   :  { %1427 = vrsqrt.f32 %v791_v4  ;;  %vm828_vm8 = vweird.f32 %v791_v4 }
 0x71a   :  { %v1428_v5 = vpop.eup %1427 }
 0x71b   :  { %v823_v6 = vmul.f32 %v1428_v5, %v791_v4  ;;  %vm829_vm7 = vweird.f32 %v1428_v5 }
 0x71c   :  { %vm830_vm9 = vmor %vm828_vm8, %vm829_vm7 }
 0x71d   :  { %v824_v7 = vmul.f32 %v1428_v5, %v823_v6 }
 0x71f   :  { %v825_v8 = vmul.f32 0.5, %v824_v7 }
 0x721   :  { %v826_v9 = vsub.f32 1.5, %v825_v8 }
 0x723   :  { %v827_v10 = vmul.f32 %v1428_v5, %v826_v9 }
 0x725   :  { %v831_v12 = vsel %vm830_vm9, %v1428_v5, %v827_v10  ;;  %v1107_v5 = vld [vmem:[%s2116_s4 + $0x50] sm:$0xff]  ;;  %v1106_v10 = vld [vmem:[%s2116_s4 + $0x48] sm:$0xff] }
 0x726   :  { %v835_v13 = vmul.f32 %v831_v12, %v1856_v11  ;;  %1120 = vmatpush.msra.mxu0 %v1107_v5  ;;  %1308 = vmatpush.msra.mxu1 %v1107_v5 }
 0x727   :  { %1309 = vmatpush.msra.mxu2 %v1107_v5  ;;  %v1097_v5 = vld [vmem:[%s2116_s4] sm:$0xff] }
 0x728   :  { %v840_v18 = vmul.f32 %v1381_v38, %v835_v13  ;;  %1121 = vmatpush.msra.mxu0 %v1106_v10  ;;  %1310 = vmatpush.msra.mxu1 %v1106_v10 }
 0x729   :  { %1311 = vmatpush.msra.mxu2 %v1106_v10 }
 0x72a   :  { %v845_v19 = vadd.f32 %v1382_v40, %v840_v18 }
 0x72c   :  { %v1910_v22 = vadd.f32 %v1456_v21, %v845_v19 }
 0x72e   :  { %1293 = vmatmul.msk.f32.gmra.mxu3 %vm65_vm0, %v1910_v22 }
 0x781   :  { %v885_v16 = vpop.f32.mrf.mxu3 }
 0x782   :  { %v1920_v25 = vadd.f32 %v1917_v24, %v885_v16  ;;  %v1105_v16 = vld [vmem:[%s2116_s4 + $0x40] sm:$0xff] }
 0x783   :  { %1122 = vmatpush.msra.mxu0 %v1105_v16  ;;  %1312 = vmatpush.msra.mxu1 %v1105_v16 }
 0x784   :  { %v1923_v11 = vmul.f32 0.70710677, %v1920_v25  ;;  %1313 = vmatpush.msra.mxu2 %v1105_v16 }
 0x786   :  { %v1926_v26 = vand.u32 2147483647, %v1923_v11 }
 0x788   :  { %v909_v27 = vmul.f32 0.5, %v1926_v26 }
 0x789   :  { %v888_v28 = vpop.f32.mrf.mxu3 }
 0x78a   :  { %v913_v29 = vadd.f32 1.0, %v909_v27  ;;  %v1930_v30 = vadd.f32 %v1917_v24, %v888_v28 }
 0x78c   :  { %1429 = vrcp.f32 %v913_v29  ;;  %v1933_v31 = vmul.f32 0.70710677, %v1930_v30  ;;  %v928_v20 = vand.u32 2147483648, %v913_v29  ;;  %v926_v41 = vand.u32 2147483647, %v913_v29 }
 0x78d   :  { %vm922_vm11 = vweird.f32 %v913_v29 }
 0x78e   :  { %v1936_v32 = vand.u32 2147483647, %v1933_v31  ;;  %v929_v45 = vor.u32 1.1754944e-38, %v928_v20  ;;  %vm927_vm13 = vcmp.eq.f32.partialorder %v926_v41, 8.507059e+37 }
 0x790   :  { %v910_v33 = vmul.f32 0.5, %v1936_v32 }
 0x791   :  { %v891_v34 = vpop.f32.mrf.mxu3 }
 0x792   :  { %v1430_v35 = vpop.eup %1429  ;;  %v1940_v36 = vadd.f32 %v1917_v24, %v891_v34  ;;  %v914_v37 = vadd.f32 1.0, %v910_v33  ;;  %v1104_v33 = vld [vmem:[%s2116_s4 + $0x38] sm:$0xff] }
 0x793   :  { %v918_v15 = vmul.f32 %v1430_v35, %v913_v29  ;;  %vm923_vm10 = vweird.f32 %v1430_v35  ;;  %1123 = vmatpush.msra.mxu0 %v1104_v33  ;;  %1314 = vmatpush.msra.mxu1 %v1104_v33 }
 0x794   :  { %v1943_v23 = vmul.f32 0.70710677, %v1940_v36  ;;  %1431 = vrcp.f32 %v914_v37  ;;  %vm924_vm12 = vmor %vm922_vm11, %vm923_vm10  ;;  %v943_v52 = vand.u32 2147483648, %v914_v37  ;;  %v941_v63 = vand.u32 2147483647, %v914_v37  ;;  %1315 = vmatpush.msra.mxu2 %v1104_v33 }
 0x795   :  { %v919_v38 = vsub.f32 1.0, %v918_v15  ;;  %vm937_vm15 = vweird.f32 %v914_v37  ;;  %vm1077_vm11 = vcmp.ge.f32.partialorder %v1923_v11, 0.0 }
 0x796   :  { %v1946_v39 = vand.u32 2147483647, %v1943_v23  ;;  %v944_v3 = vor.u32 1.1754944e-38, %v943_v52  ;;  %vm942_vm2 = vcmp.eq.f32.partialorder %v941_v63, 8.507059e+37 }
 0x797   :  { %v920_v40 = vmul.f32 %v1430_v35, %v919_v38  ;;  %v1103_v38 = vld [vmem:[%s2116_s4 + $0x30] sm:$0xff] }
 0x798   :  { %v911_v42 = vmul.f32 0.5, %v1946_v39  ;;  %1124 = vmatpush.msra.mxu0 %v1103_v38  ;;  %1316 = vmatpush.msra.mxu1 %v1103_v38 }
 0x799   :  { %v921_v43 = vadd.f32 %v1430_v35, %v920_v40  ;;  %1317 = vmatpush.msra.mxu2 %v1103_v38 }
 0x79a   :  { %v1952_v46 = vadd.f32 1.0, %v911_v42  ;;  %v1432_v47 = vpop.eup %1431 }
 0x79b   :  { %v925_v48 = vsel %vm924_vm12, %v1430_v35, %v921_v43  ;;  %v933_v53 = vmul.f32 %v1432_v47, %v914_v37  ;;  %vm938_vm14 = vweird.f32 %v1432_v47  ;;  %v1102_v43 = vld [vmem:[%s2116_s4 + $0x28] sm:$0xff]  ;;  %vm1078_vm12 = vcmp.ge.f32.partialorder %v1933_v31, 0.0 }
 0x79c   :  { %v1957_v51 = vsel %vm927_vm13, %v929_v45, %v925_v48  ;;  %1433 = vrcp.f32 %v1952_v46  ;;  %vm939_vm1 = vmor %vm937_vm15, %vm938_vm14  ;;  %v958_v13 = vand.u32 2147483648, %v1952_v46  ;;  %v956_v21 = vand.u32 2147483647, %v1952_v46  ;;  %1125 = vmatpush.msra.mxu0 %v1102_v43  ;;  %1318 = vmatpush.msra.mxu1 %v1102_v43 }
 0x79d   :  { %v977_v54 = vmul.f32 0.17087276, %v1957_v51  ;;  %v934_v56 = vsub.f32 1.0, %v933_v53  ;;  %vm952_vm4 = vweird.f32 %v1952_v46  ;;  %1319 = vmatpush.msra.mxu2 %v1102_v43  ;;  %vm1079_vm13 = vcmp.ge.f32.partialorder %v1943_v23, 0.0 }
 0x79e   :  { %v959_v35 = vor.u32 1.1754944e-38, %v958_v13  ;;  %vm957_vm6 = vcmp.eq.f32.partialorder %v956_v21, 8.507059e+37  ;;  %v899_v31 = vmul.f32 0.5, %v1940_v36 }
 0x79f   :  { %v981_v57 = vadd.f32 -0.82215226, %v977_v54  ;;  %v935_v60 = vmul.f32 %v1432_v47, %v934_v56 }
 0x7a1   :  { %v985_v0 = vmul.f32 %v981_v57, %v1957_v51  ;;  %v936_v1 = vadd.f32 %v1432_v47, %v935_v60  ;;  %v1099_v60 = vld [vmem:[%s2116_s4 + $0x10] sm:$0xff] }
 0x7a2   :  { %v1434_v14 = vpop.eup %1433 }
 0x7a3   :  { %v989_v2 = vadd.f32 1.4885159, %v985_v0  ;;  %v948_v4 = vmul.f32 %v1434_v14, %v1952_v46  ;;  %v940_v6 = vsel %vm939_vm1, %v1432_v47, %v936_v1  ;;  %vm953_vm3 = vweird.f32 %v1434_v14  ;;  %v1101_v47 = vld [vmem:[%s2116_s4 + $0x20] sm:$0xff] }
 0x7a4   :  { %v1976_v8 = vsel %vm942_vm2, %v944_v3, %v940_v6  ;;  %vm954_vm5 = vmor %vm952_vm4, %vm953_vm3  ;;  %1126 = vmatpush.msra.mxu0 %v1101_v47  ;;  %1320 = vmatpush.msra.mxu1 %v1101_v47 }
 0x7a5   :  { %v993_v7 = vmul.f32 %v989_v2, %v1957_v51  ;;  %v949_v9 = vsub.f32 1.0, %v948_v4  ;;  %v978_v12 = vmul.f32 0.17087276, %v1976_v8  ;;  %1321 = vmatpush.msra.mxu2 %v1101_v47 }
 0x7a6   :  { %1127 = vmatpush.msra.mxu0 %v1100_v55  ;;  %1322 = vmatpush.msra.mxu1 %v1100_v55 }
 0x7a7   :  { %v997_v18 = vadd.f32 -1.135204, %v993_v7  ;;  %v950_v19 = vmul.f32 %v1434_v14, %v949_v9  ;;  %v982_v27 = vadd.f32 -0.82215226, %v978_v12  ;;  %1323 = vmatpush.msra.mxu2 %v1100_v55 }
 0x7a8   :  { %1128 = vmatpush.msra.mxu0 %v1099_v60  ;;  %1324 = vmatpush.msra.mxu1 %v1099_v60 }
 0x7a9   :  { %v1001_v28 = vmul.f32 %v997_v18, %v1957_v51  ;;  %v951_v29 = vadd.f32 %v1434_v14, %v950_v19  ;;  %v986_v34 = vmul.f32 %v982_v27, %v1976_v8  ;;  %1325 = vmatpush.msra.mxu2 %v1099_v60  ;;  %v1049_v19 = vsub.f32 0.0, %v1926_v26 }
 0x7ab   :  { %v1005_v15 = vadd.f32 0.27886808, %v1001_v28  ;;  %v955_v37 = vsel %vm954_vm5, %v1434_v14, %v951_v29  ;;  %v990_v20 = vadd.f32 1.4885159, %v986_v34  ;;  %v1098_v14 = vld [vmem:[%s2116_s4 + $0x8] sm:$0xff]  ;;  %v1053_v34 = vmul.f32 %v1049_v19, %v1926_v26 }
 0x7ac   :  { %v1996_v40 = vsel %vm957_vm6, %v959_v35, %v955_v37  ;;  %1129 = vmatpush.msra.mxu0 %v1098_v14  ;;  %1326 = vmatpush.msra.mxu1 %v1098_v14 }
 0x7ad   :  { %v1009_v41 = vmul.f32 %v1005_v15, %v1957_v51  ;;  %v979_v42 = vmul.f32 0.17087276, %v1996_v40  ;;  %v994_v44 = vmul.f32 %v990_v20, %v1976_v8  ;;  %1327 = vmatpush.msra.mxu2 %v1098_v14 }
 0x7ae   :  { %1130 = vmatpush.msra.mxu0 %v1097_v5  ;;  %1328 = vmatpush.msra.mxu1 %v1097_v5 }
 0x7af   :  { %v1013_v45 = vadd.f32 -0.18628806, %v1009_v41  ;;  %v983_v46 = vadd.f32 -0.82215226, %v979_v42  ;;  %v998_v48 = vadd.f32 -1.135204, %v994_v44  ;;  %1329 = vmatpush.msra.mxu2 %v1097_v5 }
 0x7b1   :  { %v1017_v49 = vmul.f32 %v1013_v45, %v1957_v51  ;;  %v987_v53 = vmul.f32 %v983_v46, %v1996_v40  ;;  %v894_v54 = vpop.f32.mrf.mxu3  ;;  %v1002_v56 = vmul.f32 %v998_v48, %v1976_v8  ;;  %v1050_v46 = vsub.f32 0.0, %v1936_v32 }
 0x7b2   :  { %v2014_v57 = vadd.f32 %v1917_v24, %v894_v54 }
 0x7b3   :  { %v1021_v52 = vadd.f32 0.09678418, %v1017_v49  ;;  %v991_v58 = vadd.f32 1.4885159, %v987_v53  ;;  %v1006_v63 = vadd.f32 0.27886808, %v1002_v56 }
 0x7b4   :  { %v2020_v0 = vmul.f32 0.70710677, %v2014_v57 }
 0x7b5   :  { %v1025_v61 = vmul.f32 %v1021_v52, %v1957_v51  ;;  %v995_v24 = vmul.f32 %v991_v58, %v1996_v40  ;;  %v1010_v1 = vmul.f32 %v1006_v63, %v1976_v8  ;;  %v1054_v52 = vmul.f32 %v1050_v46, %v1936_v32 }
 0x7b6   :  { %v2029_v2 = vand.u32 2147483647, %v2020_v0  ;;  %vm1080_vm14 = vcmp.ge.f32.partialorder %v2020_v0, 0.0 }
 0x7b7   :  { %v1029_v3 = vadd.f32 0.37409195, %v1025_v61  ;;  %v999_v4 = vadd.f32 -1.135204, %v995_v24  ;;  %v1014_v6 = vadd.f32 -0.18628806, %v1010_v1 }
 0x7b8   :  { %v912_v7 = vmul.f32 0.5, %v2029_v2  ;;  %v1051_v1 = vsub.f32 0.0, %v1946_v39 }
 0x7b9   :  { %v1033_v9 = vmul.f32 %v1029_v3, %v1957_v51  ;;  %v1003_v10 = vmul.f32 %v999_v4, %v1996_v40  ;;  %v1018_v12 = vmul.f32 %v1014_v6, %v1976_v8 }
 0x7ba   :  { %v916_v13 = vadd.f32 1.0, %v912_v7 }
 0x7bb   :  { %v1037_v18 = vadd.f32 1.0000237, %v1033_v9  ;;  %v1007_v21 = vadd.f32 0.27886808, %v1003_v10  ;;  %v1022_v16 = vadd.f32 0.09678418, %v1018_v12  ;;  %v1055_v12 = vmul.f32 %v1051_v1, %v1946_v39 }
 0x7bc   :  { %1435 = vrcp.f32 %v916_v13  ;;  %v973_v49 = vand.u32 2147483648, %v916_v13  ;;  %v971_v55 = vand.u32 2147483647, %v916_v13  ;;  %vm967_vm8 = vweird.f32 %v916_v13 }
 0x7bd   :  { %v1041_v27 = vmul.f32 %v1037_v18, %v1957_v51  ;;  %v1011_v28 = vmul.f32 %v1007_v21, %v1996_v40  ;;  %v1026_v29 = vmul.f32 %v1022_v16, %v1976_v8 }
 0x7be   :  { %v974_v61 = vor.u32 1.1754944e-38, %v973_v49  ;;  %vm972_vm10 = vcmp.eq.f32.partialorder %v971_v55, 8.507059e+37 }
 0x7bf   :  { %v1045_v33 = vadd.f32 -1.2655122, %v1041_v27  ;;  %v1015_v35 = vadd.f32 -0.18628806, %v1011_v28  ;;  %v1030_v15 = vadd.f32 0.37409195, %v1026_v29 }
 0x7c0   :  { %v897_v27 = vmul.f32 0.5, %v1920_v25  ;;  %v898_v25 = vmul.f32 0.5, %v1930_v30 }
 0x7c1   :  { %v1057_v37 = vadd.f32 %v1053_v34, %v1045_v33  ;;  %v1019_v38 = vmul.f32 %v1015_v35, %v1996_v40  ;;  %v1034_v41 = vmul.f32 %v1030_v15, %v1976_v8 }
 0x7c2   :  { %v1436_v20 = vpop.eup %1435 }
 0x7c3   :  { %v1061_v42 = vmul.f32 1.442695, %v1057_v37  ;;  %v1023_v43 = vadd.f32 0.09678418, %v1019_v38  ;;  %v963_v44 = vmul.f32 %v1436_v20, %v916_v13  ;;  %v1038_v45 = vadd.f32 1.0000237, %v1034_v41 }
 0x7c4   :  { %vm968_vm7 = vweird.f32 %v1436_v20 }
 0x7c5   :  { %1437 = vpow2.f32 %v1061_v42  ;;  %v1027_v47 = vmul.f32 %v1023_v43, %v1996_v40  ;;  %v964_v48 = vsub.f32 1.0, %v963_v44  ;;  %v1042_v26 = vmul.f32 %v1038_v45, %v1976_v8  ;;  %vm969_vm9 = vmor %vm967_vm8, %vm968_vm7 }
 0x7c7   :  { %v1031_v53 = vadd.f32 0.37409195, %v1027_v47  ;;  %v965_v54 = vmul.f32 %v1436_v20, %v964_v48  ;;  %v1046_v56 = vadd.f32 -1.2655122, %v1042_v26 }
 0x7c9   :  { %v1035_v58 = vmul.f32 %v1031_v53, %v1996_v40  ;;  %v966_v60 = vadd.f32 %v1436_v20, %v965_v54  ;;  %v1058_v63 = vadd.f32 %v1054_v52, %v1046_v56 }
 0x7cb   :  { %v1438_v24 = vpop.eup %1437  ;;  %v1039_v14 = vadd.f32 1.0000237, %v1035_v58  ;;  %v970_v3 = vsel %vm969_vm9, %v1436_v20, %v966_v60  ;;  %v1063_v5 = vmul.f32 1.442695, %v1058_v63  ;;  %v1052_v58 = vsub.f32 0.0, %v2029_v2 }
 0x7cc   :  { %v1069_v4 = vmul.f32 %v1438_v24, %v1957_v51  ;;  %v975_v6 = vsel %vm972_vm10, %v974_v61, %v970_v3 }
 0x7cd   :  { %v1043_v7 = vmul.f32 %v1039_v14, %v1996_v40  ;;  %v980_v32 = vmul.f32 0.17087276, %v975_v6  ;;  %1439 = vpow2.f32 %v1063_v5  ;;  %v1056_v61 = vmul.f32 %v1052_v58, %v2029_v2 }
 0x7ce   :  { %v1073_v9 = vsub.f32 1.0, %v1069_v4  ;;  %v900_v5 = vmul.f32 0.5, %v2014_v57 }
 0x7cf   :  { %v1047_v10 = vadd.f32 -1.2655122, %v1043_v7  ;;  %v984_v13 = vadd.f32 -0.82215226, %v980_v32 }
 0x7d0   :  { %v1081_v18 = vsub.f32 0.0, %v1073_v9 }
 0x7d1   :  { %v1059_v19 = vadd.f32 %v1055_v12, %v1047_v10  ;;  %v988_v21 = vmul.f32 %v984_v13, %v975_v6 }
 0x7d2   :  { %v1085_v16 = vsel %vm1077_vm11, %v1073_v9, %v1081_v18  ;;  %v1384_v9 = vld [vmem:[%s2117_s5 + $0x66] ss:$0 sm:$0xff] }
 0x7d3   :  { %v1089_v51 = vadd.f32 1.0, %v1085_v16  ;;  %v1065_v28 = vmul.f32 1.442695, %v1059_v19  ;;  %v992_v29 = vadd.f32 1.4885159, %v988_v21  ;;  %v1440_v33 = vpop.eup %1439 }
 0x7d4   :  { %v1070_v35 = vmul.f32 %v1440_v33, %v1976_v8 }
 0x7d5   :  { %v1093_v34 = vmul.f32 %v1089_v51, %v897_v27  ;;  %1441 = vpow2.f32 %v1065_v28  ;;  %v996_v15 = vmul.f32 %v992_v29, %v975_v6 }
 0x7d6   :  { %v1074_v37 = vsub.f32 1.0, %v1070_v35 }
 0x7d7   :  { %v1000_v39 = vadd.f32 -1.135204, %v996_v15  ;;  %1131 = vmatmul.f32.vlgmr.msra.gmra.mxu0 %v1093_v34 }
 0x7d8   :  { %v1082_v38 = vsub.f32 0.0, %v1074_v37 }
 0x7d9   :  { %v1004_v20 = vmul.f32 %v1000_v39, %v975_v6 }
 0x7da   :  { %v1086_v41 = vsel %vm1078_vm12, %v1074_v37, %v1082_v38 }
 0x7db   :  { %v1442_v11 = vpop.eup %1441  ;;  %v1008_v42 = vadd.f32 0.27886808, %v1004_v20  ;;  %v1090_v43 = vadd.f32 1.0, %v1086_v41 }
 0x7dc   :  { %v1071_v44 = vmul.f32 %v1442_v11, %v1996_v40 }
 0x7dd   :  { %v1012_v45 = vmul.f32 %v1008_v42, %v975_v6  ;;  %v1094_v46 = vmul.f32 %v1090_v43, %v898_v25 }
 0x7de   :  { %v1075_v8 = vsub.f32 1.0, %v1071_v44 }
 0x7df   :  { %v1016_v47 = vadd.f32 -0.18628806, %v1012_v45  ;;  %1134 = vmatmul.f32.vlgmr.msra.gmra.mxu1 %v1094_v46 }
 0x7e0   :  { %v1083_v48 = vsub.f32 0.0, %v1075_v8 }
 0x7e1   :  { %v1020_v26 = vmul.f32 %v1016_v47, %v975_v6 }
 0x7e2   :  { %v1087_v49 = vsel %vm1079_vm13, %v1075_v8, %v1083_v48 }
 0x7e3   :  { %v1091_v53 = vadd.f32 1.0, %v1087_v49  ;;  %v1024_v54 = vadd.f32 0.09678418, %v1020_v26 }
 0x7e5   :  { %v1095_v55 = vmul.f32 %v1091_v53, %v899_v31  ;;  %v1028_v56 = vmul.f32 %v1024_v54, %v975_v6 }
 0x7e7   :  { %v1032_v30 = vadd.f32 0.37409195, %v1028_v56  ;;  %1137 = vmatmul.f32.vlgmr.msra.gmra.mxu2 %v1095_v55 }
 0x7e9   :  { %v1036_v52 = vmul.f32 %v1032_v30, %v975_v6 }
 0x7eb   :  { %v1040_v40 = vadd.f32 1.0000237, %v1036_v52 }
 0x7ed   :  { %v1044_v60 = vmul.f32 %v1040_v40, %v975_v6 }
 0x7ef   :  { %v1048_v63 = vadd.f32 -1.2655122, %v1044_v60  ;;  %v1385_v60 = vld [vmem:[%s2117_s5 + $0x67] ss:$0 sm:$0xff] }
 0x7f1   :  { %v1060_v24 = vadd.f32 %v1056_v61, %v1048_v63 }
 0x7f3   :  { %v1067_v23 = vmul.f32 1.442695, %v1060_v24 }
 0x7f5   :  { %1443 = vpow2.f32 %v1067_v23  ;;  %v1386_v23 = vld [vmem:[%s2117_s5 + $0x68] ss:$0 sm:$0xff]  ;;  %s1487_s5 = smov [#allocation2]  }
 0x7f6   :  { %s1256_s18 = sshll.u32 %s1487_s5, 4  ;;  %s1257_s18 = int_to_ptr.vmem [resolvable:$true] %s1256_s18 }
 0x7fb   :  { %v1444_v14 = vpop.eup %1443 }
 0x7fc   :  { %v1072_v1 = vmul.f32 %v1444_v14, %v975_v6 }
 0x7fe   :  { %v1076_v36 = vsub.f32 1.0, %v1072_v1 }
 0x800   :  { %v1084_v3 = vsub.f32 0.0, %v1076_v36 }
 0x802   :  { %v1088_v4 = vsel %vm1080_vm14, %v1076_v36, %v1084_v3 }
 0x803   :  { %v1092_v7 = vadd.f32 1.0, %v1088_v4 }
 0x805   :  { %v1096_v32 = vmul.f32 %v1092_v7, %v900_v5 }
 0x807   :  { %1140 = vmatmul.f32.gmra.mxu2 %v1096_v32 }
 0x854   :  { %v1132_v2 = vpop.f32.mrf.mxu0 }
 0x855   :  { %v1133_v10 = vadd.f32 %v1384_v9, %v1132_v2 }
 0x857   :  { %v1146_v12 = vsel %vm65_vm0, %v1133_v10, 0.0 }
 0x858   :  { %1147 = vadd.xlane.f32.xlu1 %v1146_v12 }
 0x85c   :  { %v1135_v6 = vpop.f32.mrf.mxu1 }
 0x85d   :  { %v1136_v13 = vadd.f32 %v1384_v9, %v1135_v6 }
 0x85f   :  { %v1149_v18 = vsel %vm65_vm0, %v1136_v13, 0.0 }
 0x860   :  { %1150 = vadd.xlane.f32.xlu0 %v1149_v18 }
 0x86a   :  { %v1138_v0 = vpop.f32.mrf.mxu2 }
 0x86b   :  { %v1139_v19 = vadd.f32 %v1384_v9, %v1138_v0 }
 0x86d   :  { %v1152_v57 = vsel %vm65_vm0, %v1139_v19, 0.0 }
 0x86e   :  { %1153 = vadd.xlane.f32.xlu2 %v1152_v57 }
 0x88a   :  { %v1141_v21 = vpop.f32.mrf.mxu2 }
 0x88b   :  { %v1142_v16 = vadd.f32 %v1384_v9, %v1141_v21 }
 0x88d   :  { %v1155_v27 = vsel %vm65_vm0, %v1142_v16, 0.0 }
 0x88e   :  { %1156 = vadd.xlane.f32.xlu1 %v1155_v27 }
 0x8cb   :  { %v1148_v51 = vpop.xlane.xlu1 %1147 }
 0x8cc   :  { %v1158_v28 = vmul.f32 %v1148_v51, %v1839_v59 }
 0x8ce   :  { %v1162_v29 = vsub.f32 %v1133_v10, %v1158_v28 }
 0x8d0   :  { %v1166_v33 = vmul.f32 %v1162_v29, %v1162_v29 }
 0x8d2   :  { %v1170_v34 = vsel %vm65_vm0, %v1166_v33, 0.0 }
 0x8d3   :  { %1171 = vadd.xlane.f32.xlu0 %v1170_v34  ;;  %v1151_v35 = vpop.xlane.xlu0 %1150 }
 0x8d4   :  { %v1159_v15 = vmul.f32 %v1151_v35, %v1839_v59 }
 0x8d6   :  { %v1163_v37 = vsub.f32 %v1136_v13, %v1159_v15 }
 0x8d8   :  { %v1167_v39 = vmul.f32 %v1163_v37, %v1163_v37 }
 0x8da   :  { %v1173_v38 = vsel %vm65_vm0, %v1167_v39, 0.0 }
 0x8db   :  { %1174 = vadd.xlane.f32.xlu2 %v1173_v38 }
 0x8e1   :  { %v1154_v20 = vpop.xlane.xlu2 %1153 }
 0x8e2   :  { %v1160_v11 = vmul.f32 %v1154_v20, %v1839_v59 }
 0x8e4   :  { %v2078_v41 = vsub.f32 %v1139_v19, %v1160_v11 }
 0x8e6   :  { %v1168_v42 = vmul.f32 %v2078_v41, %v2078_v41 }
 0x8e8   :  { %v1176_v25 = vsel %vm65_vm0, %v1168_v42, 0.0 }
 0x8e9   :  { %1177 = vadd.xlane.f32.xlu1 %v1176_v25 }
 0x901   :  { %v1157_v43 = vpop.xlane.xlu1 %1156 }
 0x902   :  { %v1161_v44 = vmul.f32 %v1157_v43, %v1839_v59 }
 0x904   :  { %v2084_v45 = vsub.f32 %v1142_v16, %v1161_v44 }
 0x906   :  { %v1169_v46 = vmul.f32 %v2084_v45, %v2084_v45 }
 0x908   :  { %v1179_v8 = vsel %vm65_vm0, %v1169_v46, 0.0 }
 0x909   :  { %1180 = vadd.xlane.f32.xlu0 %v1179_v8 }
 0x946   :  { %v1172_v47 = vpop.xlane.xlu0 %1171 }
 0x947   :  { %v1182_v48 = vmul.f32 %v1172_v47, %v1839_v59 }
 0x949   :  { %v1186_v26 = vadd.f32 1e-05, %v1182_v48 }
 0x94b   :  { %1445 = vrsqrt.f32 %v1186_v26  ;;  %vm1196_vm1 = vweird.f32 %v1186_v26 }
 0x94e   :  { %v1175_v49 = vpop.xlane.xlu2 %1174 }
 0x94f   :  { %v1183_v31 = vmul.f32 %v1175_v49, %v1839_v59 }
 0x951   :  { %v1446_v53 = vpop.eup %1445  ;;  %v1187_v55 = vadd.f32 1e-05, %v1183_v31 }
 0x952   :  { %v1191_v54 = vmul.f32 %v1446_v53, %v1186_v26  ;;  %vm1197_vm15 = vweird.f32 %v1446_v53 }
 0x953   :  { %1447 = vrsqrt.f32 %v1187_v55  ;;  %vm1198_vm2 = vmor %vm1196_vm1, %vm1197_vm15  ;;  %vm1206_vm4 = vweird.f32 %v1187_v55 }
 0x954   :  { %v1192_v56 = vmul.f32 %v1446_v53, %v1191_v54 }
 0x956   :  { %v1193_v30 = vmul.f32 0.5, %v1192_v56 }
 0x958   :  { %v1194_v52 = vsub.f32 1.5, %v1193_v30 }
 0x959   :  { %v1448_v40 = vpop.eup %1447 }
 0x95a   :  { %v1195_v58 = vmul.f32 %v1446_v53, %v1194_v52  ;;  %v1201_v63 = vmul.f32 %v1448_v40, %v1187_v55  ;;  %vm1207_vm3 = vweird.f32 %v1448_v40 }
 0x95b   :  { %vm1208_vm5 = vmor %vm1206_vm4, %vm1207_vm3 }
 0x95c   :  { %v1199_v61 = vsel %vm1198_vm2, %v1446_v53, %v1195_v58  ;;  %v1178_v24 = vpop.xlane.xlu1 %1177  ;;  %v1202_v1 = vmul.f32 %v1448_v40, %v1201_v63 }
 0x95d   :  { %v1230_v14 = vmul.f32 %v1199_v61, %v1162_v29  ;;  %v1184_v36 = vmul.f32 %v1178_v24, %v1839_v59 }
 0x95e   :  { %v1203_v4 = vmul.f32 0.5, %v1202_v1 }
 0x95f   :  { %v1235_v3 = vmul.f32 %v1385_v60, %v1230_v14  ;;  %v1188_v5 = vadd.f32 1e-05, %v1184_v36 }
 0x960   :  { %v1204_v32 = vsub.f32 1.5, %v1203_v4 }
 0x961   :  { %v1240_v7 = vadd.f32 %v1386_v23, %v1235_v3  ;;  %1449 = vrsqrt.f32 %v1188_v5  ;;  %vm1216_vm7 = vweird.f32 %v1188_v5 }
 0x962   :  { %v1205_v2 = vmul.f32 %v1448_v40, %v1204_v32 }
 0x963   :  { %v1244_v9 = vadd.f32 %v1240_v7, %v1885_v50 }
 0x964   :  { %v1209_v10 = vsel %vm1208_vm5, %v1448_v40, %v1205_v2 }
 0x965   :  { %1248 = vst.msk [vmem:[#allocation2] sm:$0xff] %vm65_vm0, %v1244_v9  ;;  %v1231_v12 = vmul.f32 %v1209_v10, %v1163_v37 }
 0x967   :  { %v1450_v6 = vpop.eup %1449  ;;  %v1236_v13 = vmul.f32 %v1385_v60, %v1231_v12 }
 0x968   :  { %v1211_v18 = vmul.f32 %v1450_v6, %v1188_v5  ;;  %vm1217_vm6 = vweird.f32 %v1450_v6 }
 0x969   :  { %v1241_v0 = vadd.f32 %v1386_v23, %v1236_v13  ;;  %vm1218_vm8 = vmor %vm1216_vm7, %vm1217_vm6 }
 0x96a   :  { %v1212_v19 = vmul.f32 %v1450_v6, %v1211_v18 }
 0x96b   :  { %v1245_v57 = vadd.f32 %v1241_v0, %v1893_v62 }
 0x96c   :  { %v1213_v21 = vmul.f32 0.5, %v1212_v19 }
 0x96d   :  { %1249 = vst.msk [vmem:[#allocation2 + $0x8] sm:$0xff] %vm65_vm0, %v1245_v57 }
 0x96e   :  { %v1214_v16 = vsub.f32 1.5, %v1213_v21 }
 0x970   :  { %v1215_v50 = vmul.f32 %v1450_v6, %v1214_v16 }
 0x972   :  { %v1219_v27 = vsel %vm1218_vm8, %v1450_v6, %v1215_v50 }
 0x973   :  { %v1232_v51 = vmul.f32 %v1219_v27, %v2078_v41 }
 0x975   :  { %v1237_v28 = vmul.f32 %v1385_v60, %v1232_v51 }
 0x977   :  { %v1242_v29 = vadd.f32 %v1386_v23, %v1237_v28 }
 0x979   :  { %v1246_v33 = vadd.f32 %v1242_v29, %v1901_v17 }
 0x97b   :  { %1250 = vst.msk [vmem:[#allocation2 + $0x10] sm:$0xff] %vm65_vm0, %v1246_v33 }
 0x97c   :  { %v1181_v34 = vpop.xlane.xlu0 %1180 }
 0x97d   :  { %v1185_v62 = vmul.f32 %v1181_v34, %v1839_v59 }
 0x97f   :  { %v1189_v35 = vadd.f32 1e-05, %v1185_v62 }
 0x981   :  { %1451 = vrsqrt.f32 %v1189_v35  ;;  %vm1226_vm10 = vweird.f32 %v1189_v35 }
 0x987   :  { %v1452_v15 = vpop.eup %1451 }
 0x988   :  { %v1221_v37 = vmul.f32 %v1452_v15, %v1189_v35  ;;  %vm1227_vm9 = vweird.f32 %v1452_v15 }
 0x989   :  { %vm1228_vm11 = vmor %vm1226_vm10, %vm1227_vm9 }
 0x98a   :  { %v1222_v39 = vmul.f32 %v1452_v15, %v1221_v37 }
 0x98c   :  { %v1223_v38 = vmul.f32 0.5, %v1222_v39 }
 0x98e   :  { %v1224_v20 = vsub.f32 1.5, %v1223_v38 }
 0x990   :  { %v1225_v11 = vmul.f32 %v1452_v15, %v1224_v20 }
 0x992   :  { %v1229_v41 = vsel %vm1228_vm11, %v1452_v15, %v1225_v11 }
 0x993   :  { %v1233_v42 = vmul.f32 %v1229_v41, %v2084_v45 }
 0x995   :  { %v1238_v17 = vmul.f32 %v1385_v60, %v1233_v42 }
 0x997   :  { %v1243_v59 = vadd.f32 %v1386_v23, %v1238_v17 }
 0x999   :  { %v1247_v25 = vadd.f32 %v1243_v59, %v1910_v22 }
 0x99b   :  { %1251 = vst.msk [vmem:[#allocation2 + $0x18] sm:$0xff] %vm65_vm0, %v1247_v25 }
 0x99c   :  { %1264 = dma.vmem_to_hbm [thread:$0]  %s1257_s18, 512, %s1259_s21, [#allocation3], %s1488_s22, %s1488_s22, %s1489_s3  }
 0x99d   :  { %1481 = dma.done.wait [#allocation3], 512  }
 0x99e   :  { %1482 = vsyncadd [#allocation3], 4294966784 }
 0x99f   :  { %1269 = vsyncpa [#allocation3], 1 }

</bundles_post_ra>
